<compile_context>
chip_gen: v7x
topology: tpu7x:2x2x1
jax: 0.10.0
libtpu: 0.0.40
codegen_flags: <defaults>
</compile_context>

<pallas_src>
import functools

import jax
import jax.numpy as jnp
from jax.experimental import pallas as pl
from jax.experimental.pallas import tpu as pltpu

# ---------------- model config (synthetic, matches module __init__) ----------
N_NODES = 64        # dataset.data.num_nodes
N_FEATURES = 16     # dataset.data.num_features
HIDDEN = 32         # args.hidden_dim
DEPTH = 4           # args.depth
INDP_BLOCK = 2      # args.indp_block
NUM_CLASSES = 2     # -> out_dim = 1
OUT_DIM = 1
LN_EPS = 1e-5
LANE = 128          # TPU lane width; hidden / out_dim are zero-padded to it
BATCH = 2           # number of independent forwards (feature matrices) per call
GRAPHS_PER_STEP = 2 # graphs folded into one kernel step (rows per step = GPS * N_NODES)

# TODO(synk): nn.Dropout is stochastic in train mode; here it is the eval-mode identity.


# ---------------------------- Pallas kernel ----------------------------------
def resgnn_kernel(x_ref, a_ref, w_ref, v_ref, o_ref, *, depth, indp_block, hidden, n_feat):
    # x_ref: (RB, F)        f32   RB = GRAPHS_PER_STEP * N stacked node rows, F raw features
    # a_ref: (RB, RB)       bf16  block-diagonal normalized adjacency (shared across steps)
    # w_ref: (IB+3, 128, 128) bf16  [w_in, w_gcn_0..IB-1, w1, w2] zero-padded to 128x128
    # v_ref: (8, 128)       f32   [b_in, b_gcn_0..IB-1, ln_g, ln_b, b1, b2, ln_mask]
    # o_ref: (8, 128)       f32   row 0 holds the RB logits lane-dense, rows 1..7 zero
    a = a_ref[...]
    v = v_ref[...]

    # hoisted bias / LN rows (avoid re-slicing inside the unrolled depth loop)
    b_in = v[0:1]
    b_gcn = [v[1 + i:2 + i] for i in range(indp_block)]
    ln_g = v[1 + indp_block:2 + indp_block]
    ln_b = v[2 + indp_block:3 + indp_block]
    b1 = v[3 + indp_block:4 + indp_block]
    b2 = v[4 + indp_block:5 + indp_block]
    ln_mask = v[5 + indp_block:6 + indp_block]      # 1.0 for lane < hidden else 0.0

    # in_: Linear(num_features, hidden) -> dropout (identity) -> relu
    w_in = w_ref[0, :n_feat, :]                     # (F, 128) bf16, only real rows
    h = jnp.dot(x_ref[...].astype(jnp.bfloat16), w_in,
                preferred_element_type=jnp.float32) + b_in
    h = jnp.maximum(h, 0.0)                         # (RB, 128) f32; lanes >= hidden stay 0

    # depth x resgnn_block:  x = x + relu(GCNConv(x)),  GCNConv = A_hat @ (X @ W) + b
    for d in range(depth):
        blk = d % indp_block                        # static -> static w_ref index
        xw = jnp.dot(h.astype(jnp.bfloat16), w_ref[1 + blk],
                     preferred_element_type=jnp.float32)
        fx = jnp.dot(a, xw.astype(jnp.bfloat16),
                     preferred_element_type=jnp.float32) + b_gcn[blk]
        h = h + jnp.maximum(fx, 0.0)

    # out_norm: LayerNorm over the first `hidden` lanes (pad lanes of h are exactly zero)
    inv_h = 1.0 / hidden
    mu = jnp.sum(h, axis=-1, keepdims=True) * inv_h
    c = (h - mu) * ln_mask
    var = jnp.sum(c * c, axis=-1, keepdims=True) * inv_h
    hn = (h - mu) * jax.lax.rsqrt(var + LN_EPS) * ln_g + ln_b   # pad lanes -> 0

    # out: Linear(H, H) -> ReLU -> Linear(H, out_dim)  (head lane-padded to 128)
    z = jnp.dot(hn.astype(jnp.bfloat16), w_ref[1 + indp_block],
                preferred_element_type=jnp.float32) + b1
    z = jnp.maximum(z, 0.0)
    o_full = jnp.dot(z.astype(jnp.bfloat16), w_ref[2 + indp_block],
                     preferred_element_type=jnp.float32) + b2   # (RB, 128), col 0 = logits
    # compact writeback: logits -> row 0 of a lane-dense (8,128) tile (cols 1..127 are 0)
    o_ref[...] = o_full.T[:8, :]


@jax.jit
def resgnn_forward(x, a_bd_bf16, wmat, vecs):
    """x: (B, N, F) f32; a_bd_bf16: (GPS*N, GPS*N) bf16 block-diag; packed params.
    Returns (B, N) f32 logits (per-graph x.squeeze(1), batched)."""
    B, N, F = x.shape
    assert B % GRAPHS_PER_STEP == 0
    steps = B // GRAPHS_PER_STEP
    rb = GRAPHS_PER_STEP * N
    assert rb == LANE, "logit compaction assumes GRAPHS_PER_STEP * N == 128"
    x_rows = x.reshape(B * N, F)                     # stacked rows, no lane padding

    out = pl.pallas_call(
        functools.partial(resgnn_kernel, depth=DEPTH, indp_block=INDP_BLOCK,
                          hidden=HIDDEN, n_feat=F),
        out_shape=jax.ShapeDtypeStruct((steps, 8, LANE), jnp.float32),
        grid=(steps,),
        in_specs=[
            pl.BlockSpec((rb, F), lambda s: (s, 0)),            # per-step stacked features
            pl.BlockSpec((rb, rb), lambda s: (0, 0)),           # shared block-diag A_hat
            pl.BlockSpec(wmat.shape, lambda s: (0, 0, 0)),      # packed weights (bf16)
            pl.BlockSpec(vecs.shape, lambda s: (0, 0)),         # packed biases/LN/mask (f32)
        ],
        out_specs=pl.BlockSpec((None, 8, LANE), lambda s: (s, 0, 0)),
        compiler_params=pltpu.CompilerParams(dimension_semantics=("parallel",)),
    )(x_rows, a_bd_bf16, wmat, vecs)
    # row 0 of each step tile holds that step's GPS*N logits, in stacked-row order
    return out[:, 0, :].reshape(B, N)


# --------------------------- plain-JAX reference ------------------------------
def resgnn_reference(x, a, p, use_bf16):
    if use_bf16:
        def mm(u, w):
            return jnp.dot(u.astype(jnp.bfloat16), w.astype(jnp.bfloat16),
                           preferred_element_type=jnp.float32)
    else:
        def mm(u, w):
            return jnp.dot(u, w, preferred_element_type=jnp.float32)

    h = jnp.maximum(mm(x, p["w_in"]) + p["b_in"], 0.0)
    for d in range(DEPTH):
        blk = d % INDP_BLOCK
        fx = mm(a, mm(h, p["w_gcn"][blk])) + p["b_gcn"][blk]
        h = h + jnp.maximum(fx, 0.0)
    mu = h.mean(axis=-1, keepdims=True)
    var = ((h - mu) ** 2).mean(axis=-1, keepdims=True)
    hn = (h - mu) * jax.lax.rsqrt(var + LN_EPS) * p["ln_g"] + p["ln_b"]
    z = jnp.maximum(mm(hn, p["w1"]) + p["b1"], 0.0)
    return jnp.squeeze(mm(z, p["w2"]) + p["b2"], axis=1)


# ------------------------------ glue / setup ----------------------------------
def build_normalized_adjacency(edge_index, n_nodes):
    """Dense A_hat = D^{-1/2}(A + I)D^{-1/2}  (PyG GCNConv gcn_norm, undirected)."""
    # NOTE: assumes edge_index has no explicit self-loops (true for the synthetic graph).
    src, dst = edge_index[0], edge_index[1]
    a = jnp.zeros((n_nodes, n_nodes), jnp.float32).at[dst, src].set(1.0)
    a = jnp.maximum(a, a.T)                       # symmetrize (undirected)
    a = a + jnp.eye(n_nodes, dtype=jnp.float32)   # add self loops
    deg = a.sum(axis=1)
    dinv = 1.0 / jnp.sqrt(deg)
    return dinv[:, None] * a * dinv[None, :]


def block_diag_adjacency(a, copies):
    """Block-diagonal replication of a single-graph A_hat (graphs do not mix)."""
    n = a.shape[0]
    out = jnp.zeros((copies * n, copies * n), a.dtype)
    for c in range(copies):
        out = out.at[c * n:(c + 1) * n, c * n:(c + 1) * n].set(a)
    return out


def init_params(key):
    ks = jax.random.split(key, 8)
    s = 0.1
    return {
        "w_in":  s * jax.random.normal(ks[0], (N_FEATURES, HIDDEN), jnp.float32),
        "b_in":  s * jax.random.normal(ks[1], (1, HIDDEN), jnp.float32),
        "w_gcn": s * jax.random.normal(ks[2], (INDP_BLOCK, HIDDEN, HIDDEN), jnp.float32),
        "b_gcn": s * jax.random.normal(ks[3], (INDP_BLOCK, 1, HIDDEN), jnp.float32),
        "ln_g":  jnp.ones((1, HIDDEN), jnp.float32),
        "ln_b":  jnp.zeros((1, HIDDEN), jnp.float32),
        "w1":    s * jax.random.normal(ks[4], (HIDDEN, HIDDEN), jnp.float32),
        "b1":    s * jax.random.normal(ks[5], (1, HIDDEN), jnp.float32),
        "w2":    s * jax.random.normal(ks[6], (HIDDEN, OUT_DIM), jnp.float32),
        "b2":    s * jax.random.normal(ks[7], (1, OUT_DIM), jnp.float32),
    }


def pack_params(p):
    """Pack all weights into one bf16 (IB+3,128,128) stack and all row-vectors (plus the
    LayerNorm lane mask) into one f32 (8,128) stack; zero padding keeps the padded math
    exactly equal to the real math."""
    def pad_mat(w):
        out = jnp.zeros((LANE, LANE), jnp.float32)
        return out.at[:w.shape[0], :w.shape[1]].set(w)

    def pad_vec(v):
        out = jnp.zeros((1, LANE), jnp.float32)
        return out.at[:, :v.shape[1]].set(v)

    mats = ([p["w_in"]] + [p["w_gcn"][i] for i in range(INDP_BLOCK)]
            + [p["w1"], p["w2"]])
    wmat = jnp.stack([pad_mat(m) for m in mats]).astype(jnp.bfloat16)  # (IB+3,128,128)

    ln_mask = jnp.zeros((1, LANE), jnp.float32).at[:, :HIDDEN].set(1.0)
    vec_rows = ([p["b_in"]] + [p["b_gcn"][i] for i in range(INDP_BLOCK)]
                + [p["ln_g"], p["ln_b"], p["b1"], p["b2"]])
    rows = [pad_vec(v) for v in vec_rows] + [ln_mask]
    pad_rows = (-len(rows)) % 8
    vecs = jnp.concatenate(rows + [jnp.zeros((pad_rows, LANE), jnp.float32)], axis=0)
    return wmat, vecs


if __name__ == "__main__":
    key = jax.random.PRNGKey(0)
    k_x, k_p = jax.random.split(key)

    # batch of node-feature matrices sharing one fixed graph
    x = jax.random.normal(k_x, (BATCH, N_NODES, N_FEATURES), jnp.float32)

    # deterministic undirected graph: ring + skip-7 chords, both directions
    i = jnp.arange(N_NODES, dtype=jnp.int32)
    src = jnp.concatenate([i, (i + 1) % N_NODES, i, (i + 7) % N_NODES])
    dst = jnp.concatenate([(i + 1) % N_NODES, i, (i + 7) % N_NODES, i])
    edge_index = jnp.stack([src, dst])            # (2, 256)

    # hoisted one-time setup: adjacency (block-diag, bf16) + packed parameters
    a_hat = build_normalized_adjacency(edge_index, N_NODES)
    a_bf16 = a_hat.astype(jnp.bfloat16)
    a_bd = block_diag_adjacency(a_bf16, GRAPHS_PER_STEP)   # (128, 128) bf16
    params = init_params(k_p)
    wmat, vecs = pack_params(params)

    out = resgnn_forward(x, a_bd, wmat, vecs)
    out = jax.block_until_ready(out)
    assert out.shape == (BATCH, N_NODES), out.shape

    # matched-precision reference (same bf16-operand / f32-accumulate numerics) -> tight
    ref_bf16 = jnp.stack([resgnn_reference(x[b], a_bf16, params, use_bf16=True)
                          for b in range(BATCH)])
    assert jnp.allclose(out, ref_bf16, atol=1e-3, rtol=1e-3), "mismatch vs matched reference"

    # full-f32 reference (original module numerics) -> loose sanity bound for bf16 matmuls
    ref_f32 = jnp.stack([resgnn_reference(x[b], a_hat, params, use_bf16=False)
                         for b in range(BATCH)])
    assert jnp.allclose(out, ref_f32, atol=5e-2, rtol=5e-2), "mismatch vs f32 reference"

    print("KERNEL_OK")
</pallas_src>

<mosaic_0001>
module attributes {stable_mosaic.version = 11 : i64} {
  func.func @resgnn_kernel(%arg0: i32, %arg1: memref<128x16xf32, #tpu.memory_space<vmem>>, %arg2: memref<128x128xbf16, #tpu.memory_space<vmem>>, %arg3: memref<5x128x128xbf16, #tpu.memory_space<vmem>>, %arg4: memref<8x128xf32, #tpu.memory_space<vmem>>, %arg5: memref<1x8x128xf32, #tpu.memory_space<vmem>>) attributes {dimension_semantics = [#tpu.dimension_semantics<parallel>], iteration_bounds = array<i64: 1>, scalar_prefetch = 0 : i64, scratch_operands = 0 : i64, tpu.core_type = #tpu.core_type<tc>, window_params = [{transform_indices = @transform_0, window_bounds = array<i64: 128, 16>}, {pipeline_mode = #tpu.pipeline_mode<synchronous>, transform_indices = @transform_1, window_bounds = array<i64: 128, 128>}, {pipeline_mode = #tpu.pipeline_mode<synchronous>, transform_indices = @transform_2, window_bounds = array<i64: 5, 128, 128>}, {pipeline_mode = #tpu.pipeline_mode<synchronous>, transform_indices = @transform_3, window_bounds = array<i64: 8, 128>}, {transform_indices = @transform_4, window_bounds = array<i64: 1, 8, 128>}]} {
    %c0 = arith.constant 0 : index
    %c0_0 = arith.constant 0 : index
    %0 = vector.load %arg2[%c0, %c0_0] : memref<128x128xbf16, #tpu.memory_space<vmem>>, vector<128x128xbf16>
    %c0_1 = arith.constant 0 : index
    %c0_2 = arith.constant 0 : index
    %1 = vector.load %arg4[%c0_1, %c0_2] : memref<8x128xf32, #tpu.memory_space<vmem>>, vector<8x128xf32>
    %2 = vector.extract_strided_slice %1 {offsets = [0, 0], sizes = [1, 128], strides = [1, 1]} : vector<8x128xf32> to vector<1x128xf32>
    %3 = vector.extract_strided_slice %1 {offsets = [1, 0], sizes = [1, 128], strides = [1, 1]} : vector<8x128xf32> to vector<1x128xf32>
    %4 = vector.extract_strided_slice %1 {offsets = [2, 0], sizes = [1, 128], strides = [1, 1]} : vector<8x128xf32> to vector<1x128xf32>
    %5 = vector.extract_strided_slice %1 {offsets = [3, 0], sizes = [1, 128], strides = [1, 1]} : vector<8x128xf32> to vector<1x128xf32>
    %6 = vector.extract_strided_slice %1 {offsets = [4, 0], sizes = [1, 128], strides = [1, 1]} : vector<8x128xf32> to vector<1x128xf32>
    %7 = vector.extract_strided_slice %1 {offsets = [5, 0], sizes = [1, 128], strides = [1, 1]} : vector<8x128xf32> to vector<1x128xf32>
    %8 = vector.extract_strided_slice %1 {offsets = [6, 0], sizes = [1, 128], strides = [1, 1]} : vector<8x128xf32> to vector<1x128xf32>
    %9 = vector.extract_strided_slice %1 {offsets = [7, 0], sizes = [1, 128], strides = [1, 1]} : vector<8x128xf32> to vector<1x128xf32>
    %c0_3 = arith.constant 0 : index
    %c0_4 = arith.constant 0 : index
    %c0_5 = arith.constant 0 : index
    %10 = vector.load %arg3[%c0_3, %c0_4, %c0_5] : memref<5x128x128xbf16, #tpu.memory_space<vmem>>, vector<1x16x128xbf16>
    %11 = vector.shape_cast %10 : vector<1x16x128xbf16> to vector<16x128xbf16>
    %c0_6 = arith.constant 0 : index
    %c0_7 = arith.constant 0 : index
    %12 = vector.load %arg1[%c0_6, %c0_7] : memref<128x16xf32, #tpu.memory_space<vmem>>, vector<128x16xf32>
    %13 = arith.truncf %12 : vector<128x16xf32> to vector<128x16xbf16>
    %cst = arith.constant dense<0.000000e+00> : vector<128x128xf32>
    %14 = tpu.matmul %13, %11, %cst {dimension_numbers = #tpu.dot_dimension_numbers<[1], [0], [0], [1], [0, 0, 1, 1], [], []>} : vector<128x16xbf16>, vector<16x128xbf16>, vector<128x128xf32> -> vector<128x128xf32>
    %15 = vector.broadcast %2 : vector<1x128xf32> to vector<128x128xf32>
    %16 = arith.addf %14, %15 : vector<128x128xf32>
    %cst_8 = arith.constant 0.000000e+00 : f32
    %17 = vector.broadcast %cst_8 : f32 to vector<128x128xf32>
    %18 = arith.maximumf %16, %17 : vector<128x128xf32>
    %19 = arith.truncf %18 : vector<128x128xf32> to vector<128x128xbf16>
    %c1 = arith.constant 1 : index
    %c0_9 = arith.constant 0 : index
    %c0_10 = arith.constant 0 : index
    %20 = vector.load %arg3[%c1, %c0_9, %c0_10] : memref<5x128x128xbf16, #tpu.memory_space<vmem>>, vector<1x128x128xbf16>
    %21 = vector.shape_cast %20 : vector<1x128x128xbf16> to vector<128x128xbf16>
    %cst_11 = arith.constant dense<0.000000e+00> : vector<128x128xf32>
    %22 = tpu.matmul %19, %21, %cst_11 {dimension_numbers = #tpu.dot_dimension_numbers<[1], [0], [0], [1], [0, 0, 1, 1], [], []>} : vector<128x128xbf16>, vector<128x128xbf16>, vector<128x128xf32> -> vector<128x128xf32>
    %23 = arith.truncf %22 : vector<128x128xf32> to vector<128x128xbf16>
    %cst_12 = arith.constant dense<0.000000e+00> : vector<128x128xf32>
    %24 = tpu.matmul %0, %23, %cst_12 {dimension_numbers = #tpu.dot_dimension_numbers<[1], [0], [0], [1], [0, 0, 1, 1], [], []>} : vector<128x128xbf16>, vector<128x128xbf16>, vector<128x128xf32> -> vector<128x128xf32>
    %25 = vector.broadcast %3 : vector<1x128xf32> to vector<128x128xf32>
    %26 = arith.addf %24, %25 : vector<128x128xf32>
    %cst_13 = arith.constant 0.000000e+00 : f32
    %27 = vector.broadcast %cst_13 : f32 to vector<128x128xf32>
    %28 = arith.maximumf %26, %27 : vector<128x128xf32>
    %29 = arith.addf %18, %28 : vector<128x128xf32>
    %30 = arith.truncf %29 : vector<128x128xf32> to vector<128x128xbf16>
    %c2 = arith.constant 2 : index
    %c0_14 = arith.constant 0 : index
    %c0_15 = arith.constant 0 : index
    %31 = vector.load %arg3[%c2, %c0_14, %c0_15] : memref<5x128x128xbf16, #tpu.memory_space<vmem>>, vector<1x128x128xbf16>
    %32 = vector.shape_cast %31 : vector<1x128x128xbf16> to vector<128x128xbf16>
    %cst_16 = arith.constant dense<0.000000e+00> : vector<128x128xf32>
    %33 = tpu.matmul %30, %32, %cst_16 {dimension_numbers = #tpu.dot_dimension_numbers<[1], [0], [0], [1], [0, 0, 1, 1], [], []>} : vector<128x128xbf16>, vector<128x128xbf16>, vector<128x128xf32> -> vector<128x128xf32>
    %34 = arith.truncf %33 : vector<128x128xf32> to vector<128x128xbf16>
    %cst_17 = arith.constant dense<0.000000e+00> : vector<128x128xf32>
    %35 = tpu.matmul %0, %34, %cst_17 {dimension_numbers = #tpu.dot_dimension_numbers<[1], [0], [0], [1], [0, 0, 1, 1], [], []>} : vector<128x128xbf16>, vector<128x128xbf16>, vector<128x128xf32> -> vector<128x128xf32>
    %36 = vector.broadcast %4 : vector<1x128xf32> to vector<128x128xf32>
    %37 = arith.addf %35, %36 : vector<128x128xf32>
    %cst_18 = arith.constant 0.000000e+00 : f32
    %38 = vector.broadcast %cst_18 : f32 to vector<128x128xf32>
    %39 = arith.maximumf %37, %38 : vector<128x128xf32>
    %40 = arith.addf %29, %39 : vector<128x128xf32>
    %41 = arith.truncf %40 : vector<128x128xf32> to vector<128x128xbf16>
    %c1_19 = arith.constant 1 : index
    %c0_20 = arith.constant 0 : index
    %c0_21 = arith.constant 0 : index
    %42 = vector.load %arg3[%c1_19, %c0_20, %c0_21] : memref<5x128x128xbf16, #tpu.memory_space<vmem>>, vector<1x128x128xbf16>
    %43 = vector.shape_cast %42 : vector<1x128x128xbf16> to vector<128x128xbf16>
    %cst_22 = arith.constant dense<0.000000e+00> : vector<128x128xf32>
    %44 = tpu.matmul %41, %43, %cst_22 {dimension_numbers = #tpu.dot_dimension_numbers<[1], [0], [0], [1], [0, 0, 1, 1], [], []>} : vector<128x128xbf16>, vector<128x128xbf16>, vector<128x128xf32> -> vector<128x128xf32>
    %45 = arith.truncf %44 : vector<128x128xf32> to vector<128x128xbf16>
    %cst_23 = arith.constant dense<0.000000e+00> : vector<128x128xf32>
    %46 = tpu.matmul %0, %45, %cst_23 {dimension_numbers = #tpu.dot_dimension_numbers<[1], [0], [0], [1], [0, 0, 1, 1], [], []>} : vector<128x128xbf16>, vector<128x128xbf16>, vector<128x128xf32> -> vector<128x128xf32>
    %47 = vector.broadcast %3 : vector<1x128xf32> to vector<128x128xf32>
    %48 = arith.addf %46, %47 : vector<128x128xf32>
    %cst_24 = arith.constant 0.000000e+00 : f32
    %49 = vector.broadcast %cst_24 : f32 to vector<128x128xf32>
    %50 = arith.maximumf %48, %49 : vector<128x128xf32>
    %51 = arith.addf %40, %50 : vector<128x128xf32>
    %52 = arith.truncf %51 : vector<128x128xf32> to vector<128x128xbf16>
    %c2_25 = arith.constant 2 : index
    %c0_26 = arith.constant 0 : index
    %c0_27 = arith.constant 0 : index
    %53 = vector.load %arg3[%c2_25, %c0_26, %c0_27] : memref<5x128x128xbf16, #tpu.memory_space<vmem>>, vector<1x128x128xbf16>
    %54 = vector.shape_cast %53 : vector<1x128x128xbf16> to vector<128x128xbf16>
    %cst_28 = arith.constant dense<0.000000e+00> : vector<128x128xf32>
    %55 = tpu.matmul %52, %54, %cst_28 {dimension_numbers = #tpu.dot_dimension_numbers<[1], [0], [0], [1], [0, 0, 1, 1], [], []>} : vector<128x128xbf16>, vector<128x128xbf16>, vector<128x128xf32> -> vector<128x128xf32>
    %56 = arith.truncf %55 : vector<128x128xf32> to vector<128x128xbf16>
    %cst_29 = arith.constant dense<0.000000e+00> : vector<128x128xf32>
    %57 = tpu.matmul %0, %56, %cst_29 {dimension_numbers = #tpu.dot_dimension_numbers<[1], [0], [0], [1], [0, 0, 1, 1], [], []>} : vector<128x128xbf16>, vector<128x128xbf16>, vector<128x128xf32> -> vector<128x128xf32>
    %58 = vector.broadcast %4 : vector<1x128xf32> to vector<128x128xf32>
    %59 = arith.addf %57, %58 : vector<128x128xf32>
    %cst_30 = arith.constant 0.000000e+00 : f32
    %60 = vector.broadcast %cst_30 : f32 to vector<128x128xf32>
    %61 = arith.maximumf %59, %60 : vector<128x128xf32>
    %62 = arith.addf %51, %61 : vector<128x128xf32>
    %cst_31 = arith.constant dense<0.000000e+00> : vector<128xf32>
    %63 = vector.multi_reduction <add>, %62, %cst_31 [1] : vector<128x128xf32> to vector<128xf32>
    %64 = vector.shape_cast %63 : vector<128xf32> to vector<128x1xf32>
    %cst_32 = arith.constant 3.125000e-02 : f32
    %65 = vector.broadcast %cst_32 : f32 to vector<128x1xf32>
    %66 = arith.mulf %64, %65 : vector<128x1xf32>
    %67 = vector.broadcast %66 : vector<128x1xf32> to vector<128x128xf32>
    %68 = arith.subf %62, %67 : vector<128x128xf32>
    %69 = vector.broadcast %9 : vector<1x128xf32> to vector<128x128xf32>
    %70 = arith.mulf %68, %69 : vector<128x128xf32>
    %71 = arith.mulf %70, %70 : vector<128x128xf32>
    %cst_33 = arith.constant dense<0.000000e+00> : vector<128xf32>
    %72 = vector.multi_reduction <add>, %71, %cst_33 [1] : vector<128x128xf32> to vector<128xf32>
    %73 = vector.shape_cast %72 : vector<128xf32> to vector<128x1xf32>
    %cst_34 = arith.constant 3.125000e-02 : f32
    %74 = vector.broadcast %cst_34 : f32 to vector<128x1xf32>
    %75 = arith.mulf %73, %74 : vector<128x1xf32>
    %76 = vector.broadcast %66 : vector<128x1xf32> to vector<128x128xf32>
    %77 = arith.subf %62, %76 : vector<128x128xf32>
    %cst_35 = arith.constant 9.99999974E-6 : f32
    %78 = vector.broadcast %cst_35 : f32 to vector<128x1xf32>
    %79 = arith.addf %75, %78 : vector<128x1xf32>
    %80 = math.rsqrt %79 : vector<128x1xf32>
    %81 = vector.broadcast %80 : vector<128x1xf32> to vector<128x128xf32>
    %82 = arith.mulf %77, %81 : vector<128x128xf32>
    %83 = vector.broadcast %5 : vector<1x128xf32> to vector<128x128xf32>
    %84 = arith.mulf %82, %83 : vector<128x128xf32>
    %85 = vector.broadcast %6 : vector<1x128xf32> to vector<128x128xf32>
    %86 = arith.addf %84, %85 : vector<128x128xf32>
    %87 = arith.truncf %86 : vector<128x128xf32> to vector<128x128xbf16>
    %c3 = arith.constant 3 : index
    %c0_36 = arith.constant 0 : index
    %c0_37 = arith.constant 0 : index
    %88 = vector.load %arg3[%c3, %c0_36, %c0_37] : memref<5x128x128xbf16, #tpu.memory_space<vmem>>, vector<1x128x128xbf16>
    %89 = vector.shape_cast %88 : vector<1x128x128xbf16> to vector<128x128xbf16>
    %cst_38 = arith.constant dense<0.000000e+00> : vector<128x128xf32>
    %90 = tpu.matmul %87, %89, %cst_38 {dimension_numbers = #tpu.dot_dimension_numbers<[1], [0], [0], [1], [0, 0, 1, 1], [], []>} : vector<128x128xbf16>, vector<128x128xbf16>, vector<128x128xf32> -> vector<128x128xf32>
    %91 = vector.broadcast %7 : vector<1x128xf32> to vector<128x128xf32>
    %92 = arith.addf %90, %91 : vector<128x128xf32>
    %cst_39 = arith.constant 0.000000e+00 : f32
    %93 = vector.broadcast %cst_39 : f32 to vector<128x128xf32>
    %94 = arith.maximumf %92, %93 : vector<128x128xf32>
    %95 = arith.truncf %94 : vector<128x128xf32> to vector<128x128xbf16>
    %c4 = arith.constant 4 : index
    %c0_40 = arith.constant 0 : index
    %c0_41 = arith.constant 0 : index
    %96 = vector.load %arg3[%c4, %c0_40, %c0_41] : memref<5x128x128xbf16, #tpu.memory_space<vmem>>, vector<1x128x128xbf16>
    %97 = vector.shape_cast %96 : vector<1x128x128xbf16> to vector<128x128xbf16>
    %cst_42 = arith.constant dense<0.000000e+00> : vector<128x128xf32>
    %98 = tpu.matmul %95, %97, %cst_42 {dimension_numbers = #tpu.dot_dimension_numbers<[1], [0], [0], [1], [0, 0, 1, 1], [], []>} : vector<128x128xbf16>, vector<128x128xbf16>, vector<128x128xf32> -> vector<128x128xf32>
    %99 = vector.broadcast %8 : vector<1x128xf32> to vector<128x128xf32>
    %100 = arith.addf %98, %99 : vector<128x128xf32>
    %101 = tpu.transpose %100, [1, 0] : vector<128x128xf32> -> vector<128x128xf32>
    %102 = vector.extract_strided_slice %101 {offsets = [0, 0], sizes = [8, 128], strides = [1, 1]} : vector<128x128xf32> to vector<8x128xf32>
    %c0_43 = arith.constant 0 : index
    %c0_44 = arith.constant 0 : index
    %c0_45 = arith.constant 0 : index
    %103 = vector.load %arg5[%c0_43, %c0_44, %c0_45] : memref<1x8x128xf32, #tpu.memory_space<vmem>>, vector<1x8x128xf32>
    %104 = vector.shape_cast %103 : vector<1x8x128xf32> to vector<8x128xf32>
    %105 = vector.shape_cast %102 : vector<8x128xf32> to vector<1x8x128xf32>
    tpu.vector_store %arg5[%c0_43, %c0_44, %c0_45], %105 {strides = array<i32>} : memref<1x8x128xf32, #tpu.memory_space<vmem>>, vector<1x8x128xf32>,
    return
  }
  func.func @transform_0(%arg0: i32) -> (i32, i32) {
    %c0_i32 = arith.constant 0 : i32
    %c0_i32_0 = arith.constant 0 : i32
    return %arg0, %c0_i32 : i32, i32
  }
  func.func @transform_1(%arg0: i32) -> (i32, i32) {
    %c0_i32 = arith.constant 0 : i32
    %c0_i32_0 = arith.constant 0 : i32
    %c0_i32_1 = arith.constant 0 : i32
    return %c0_i32, %c0_i32_0 : i32, i32
  }
  func.func @transform_2(%arg0: i32) -> (i32, i32, i32) {
    %c0_i32 = arith.constant 0 : i32
    %c0_i32_0 = arith.constant 0 : i32
    %c0_i32_1 = arith.constant 0 : i32
    %c0_i32_2 = arith.constant 0 : i32
    return %c0_i32, %c0_i32_0, %c0_i32_1 : i32, i32, i32
  }
  func.func @transform_3(%arg0: i32) -> (i32, i32) {
    %c0_i32 = arith.constant 0 : i32
    %c0_i32_0 = arith.constant 0 : i32
    %c0_i32_1 = arith.constant 0 : i32
    return %c0_i32, %c0_i32_0 : i32, i32
  }
  func.func @transform_4(%arg0: i32) -> (i32, i32, i32) {
    %c0_i32 = arith.constant 0 : i32
    %c0_i32_0 = arith.constant 0 : i32
    %c0_i32_1 = arith.constant 0 : i32
    return %arg0, %c0_i32, %c0_i32_0 : i32, i32, i32
  }
}

</mosaic_0001>

<bundles_post_ra>
// kernel: squeeze.1
= control target key start
LH: loop header
LB: loop body
LE: loop exit
PB: predicated region body
PF: predicated region fallthrough
CT: control target
= control target key end

     0   :  { %s85_s0 = inlined_call_operand.vmem [shape: f32[128], index: 0, kind: input, shape index: {}]   ;;  %s86_s1 = inlined_call_operand.hbm [shape: f32[2,64], index: 1, kind: output, shape index: {}]  }
   0x1   :  { %v5_v0 = vld [vmem:[%s85_s0] sm:$0x1] }
   0x2   :  { %2 = vsyncpa [#allocation1], 0  ;;  %6 = vst [vmem:[#allocation3] sm:$0x1] %v5_v0  ;;  %vm8_vm0 = vcmask 523264   ;;  %s58_s0 = smov 64  }
   0x3   :  { %s59_s8 = smov [#allocation0]  }
   0x4   :  { %s26_s9 = sshll.u32 %s59_s8, 4  ;;  %s27_s9 = int_to_ptr.vmem [resolvable:$true] %s26_s9 }
   0x5   :  { %s34_s10 = scalar_lea.vmem %s27_s9, 32  ;;  %p39_p1 = scmp.lt.s32.totalorder %s27_s9, %s27_s9 }
   0x6   :  { %p35_p0 = scmp.ne.s32.totalorder %s27_s9, %s34_s10  ;;  %p40_p2 = scmp.lt.s32.totalorder %s34_s10, %s34_s10 }
   0x8   :  { %p41_p3 = por %p40_p2, %p39_p1 }
   0x9   :  { %v10_v1 = vld [vmem:[#allocation3] sm:$0x1]  }
   0xa   :  { %v7_v2 = vld [vmem:[#allocation3] sm:$0x1]   ;;  %11 = vrot.lane.b32.xlu0 %v10_v1, %s58_s0  ;;  %p42_p4 = pnand %p41_p3, %p35_p0 }
   0xb   :  { %9 = vst.msk [vmem:[#allocation2] sm:$0x1] %vm8_vm0, %v7_v2  }
  0x7c   :  { %v12_v3 = vpop.permute.xlu0 %11  }
  0x7d   :  { %15 = vst.msk [vmem:[#allocation2 + $0x1] sm:$0x1] %vm8_vm0, %v12_v3  }
  0x84   :  { %v19_v4 = vld [vmem:[#allocation2] sm:$0x3] }
  0x85   :  { %21 = vst [vmem:[#allocation0] sm:$0x3] %v19_v4 }
  0x86   :  { %45 = shalt.err (!%p42_p4)
}
  0x87   :  { %s46_s13 = scalar_lea.hbm %s86_s1, 32 }
  0x88   :  { %p47_p5 = scmp.ne.s32.totalorder %s86_s1, %s46_s13  ;;  %p50_p6 = scmp.lt.u32.totalorder %s46_s13, %s86_s1 }
  0x8a   :  { %p52_p7 = pnand %p50_p6, %p47_p5 }
  0x8c   :  { %55 = shalt.err (!%p52_p7)
}
  0x8d   :  { %29 = dma.vmem_to_hbm [thread:$0]  %s27_s9, 32, %s86_s1, [#allocation1]  }
  0x8e   :  { %56 = dma.done.wait [#allocation1], 32  }
  0x8f   :  { %57 = vsyncadd [#allocation1], 4294967264 }
  0x90   :  { %31 = vsyncpa [#allocation1], 1 }

// kernel: resgnn_forward.1
= control target key start
LH: loop header
LB: loop body
LE: loop exit
PB: predicated region body
PF: predicated region fallthrough
CT: control target
= control target key end

     0   :  { %9 = vsyncpa [#allocation3], 0  ;;  %s2672_s15 = smov [#allocation2]   ;;  %s3521_s0 = inlined_call_operand.vmem [shape: f32[128,16], index: 0, kind: input, shape index: {}]   ;;  %s3522_s1 = inlined_call_operand.vmem [shape: bf16[128,128], index: 1, kind: input, shape index: {}]   ;;  %s3523_s2 = inlined_call_operand.hbm [shape: bf16[5,128,128], index: 2, kind: input, shape index: {}]   ;;  %s3524_s3 = inlined_call_operand.vmem [shape: f32[8,128], index: 3, kind: input, shape index: {}]   ;;  %s3525_s4 = inlined_call_operand.vmem [shape: f32[1,8,128], index: 4, kind: output, shape index: {}]  }
   0x1   :  { %s19_s16 = sshll.u32 %s2672_s15, 4  ;;  %s2648_s19 = scalar_lea.hbm %s3523_s2, 5120  ;;  %s20_s16 = int_to_ptr.vmem [resolvable:$true] %s19_s16 }
   0x2   :  { %p2649_p0 = scmp.ne.s32.totalorder %s3523_s2, %s2648_s19  ;;  %p2652_p1 = scmp.lt.u32.totalorder %s2648_s19, %s3523_s2 }
   0x4   :  { %p2654_p2 = pnand %p2652_p1, %p2649_p0 }
   0x6   :  { %2657 = shalt.err (!%p2654_p2)
}
   0x7   :  { %s2658_s24 = scalar_lea.vmem %s20_s16, 5120  ;;  %p2663_p4 = scmp.lt.s32.totalorder %s20_s16, %s20_s16 }
   0x8   :  { %p2659_p3 = scmp.ne.s32.totalorder %s20_s16, %s2658_s24  ;;  %p2664_p5 = scmp.lt.s32.totalorder %s2658_s24, %s2658_s24 }
   0xa   :  { %p2665_p6 = por %p2664_p5, %p2663_p4 }
   0xc   :  { %p2666_p7 = pnand %p2665_p6, %p2659_p3 }
   0xe   :  { %2669 = shalt.err (!%p2666_p7)
}
   0xf   :  { %s2673_s25 = smov 64   ;;  %s2674_s26 = smov 4  }
  0x10   :  { %25 = dma.hbm_to_vmem [thread:$0]  %s3523_s2, 5120, %s20_s16, [#allocation3], %s2673_s25, %s2673_s25, %s2674_s26  }
  0x11   :  { %2670 = dma.done.wait [#allocation3], 5120  }
  0x12   :  { %2671 = vsyncadd [#allocation3], 4294962176  ;;  %v2574_v0 = vld [vmem:[#allocation2] sm:$0xff]   ;;  %v52_v2 = vld [vmem:[%s3521_s0 + $0x8] sm:$0xff]  ;;  %vm85_vm0 = vcmask 130048   ;;  %v75_v33 = vlaneseq }
  0x13   :  { %v51_v1 = vld [vmem:[%s3521_s0] sm:$0xff]  ;;  %v53_v3 = vld [vmem:[%s3521_s0 + $0x10] sm:$0xff]  ;;  %2233 = vmatprep.subr.bf16.mxu0 %v2574_v0  ;;  %v54_v5 = vld [vmem:[%s3521_s0 + $0x18] sm:$0xff] }
  0x14   :  { %v67_v4 = vpack.c.bf16 %v52_v2, %v51_v1  ;;  %v55_v6 = vld [vmem:[%s3521_s0 + $0x20] sm:$0xff]  ;;  %v56_v7 = vld [vmem:[%s3521_s0 + $0x28] sm:$0xff]  ;;  %2234 = vmatpush3.bf16.msra.mxu0 %v2574_v0  ;;  %v68_v8 = vpack.c.bf16 %v54_v5, %v53_v3  ;;  %v57_v10 = vld [vmem:[%s3521_s0 + $0x30] sm:$0xff]  ;;  %v2800_v34 = vshrl.u32 %v75_v33, 7 }
  0x15   :  { %v69_v9 = vpack.c.bf16 %v56_v7, %v55_v6  ;;  %v58_v11 = vld [vmem:[%s3521_s0 + $0x38] sm:$0xff]  ;;  %v59_v12 = vld [vmem:[%s3521_s0 + $0x40] sm:$0xff]  ;;  %v60_v13 = vld [vmem:[%s3521_s0 + $0x48] sm:$0xff] }
  0x16   :  { %2235 = vmatprep.mubr.msk.bf16.mxu0 %vm85_vm0, %v67_v4  ;;  %v2745_v14 = vld [vmem:[#allocation2 + $0x40] sm:$0xff]   ;;  %v2747_v15 = vld [vmem:[#allocation2 + $0x48] sm:$0xff]   ;;  %v70_v16 = vpack.c.bf16 %v58_v11, %v57_v10  ;;  %v71_v17 = vpack.c.bf16 %v60_v13, %v59_v12  ;;  %v2752_v18 = vld [vmem:[#allocation2 + $0x50] sm:$0xff]   ;;  %v77_v35 = vsub.s32 0, %v2800_v34 }
  0x17   :  { %2236 = vmatmul.mubr.msk.bf16.vlgmr.msra.gmra.mrb[0].mxu0 %vm85_vm0, %v68_v8  ;;  %2251 = vmatprep.subr.bf16.mxu1 %v2745_v14  ;;  %v61_v19 = vld [vmem:[%s3521_s0 + $0x50] sm:$0xff]  ;;  %v62_v20 = vld [vmem:[%s3521_s0 + $0x58] sm:$0xff]  ;;  %v63_v22 = vld [vmem:[%s3521_s0 + $0x60] sm:$0xff] }
  0x18   :  { %2239 = vmatprep.mubr.msk.bf16.mxu0 %vm85_vm0, %v69_v9  ;;  %2252 = vmatpush3.bf16.msra.mxu1 %v2745_v14  ;;  %v2760_v21 = vld [vmem:[#allocation2 + $0x58] sm:$0xff]   ;;  %v64_v23 = vld [vmem:[%s3521_s0 + $0x68] sm:$0xff]  ;;  %v2772_v24 = vld [vmem:[#allocation2 + $0x60] sm:$0xff]   ;;  %v72_v25 = vpack.c.bf16 %v62_v20, %v61_v19 }
  0x19   :  { %2253 = vmatprep.subr.bf16.mxu1 %v2747_v15  ;;  %v73_v26 = vpack.c.bf16 %v64_v23, %v63_v22  ;;  %v65_v27 = vld [vmem:[%s3521_s0 + $0x70] sm:$0xff]  ;;  %v66_v28 = vld [vmem:[%s3521_s0 + $0x78] sm:$0xff]  ;;  %v2782_v29 = vld [vmem:[#allocation2 + $0x68] sm:$0xff]  }
  0x1a   :  { %v74_v30 = vpack.c.bf16 %v66_v28, %v65_v27  ;;  %v2792_v31 = vld [vmem:[#allocation2 + $0x70] sm:$0xff]   ;;  %v2796_v32 = vld [vmem:[#allocation2 + $0x78] sm:$0xff]   ;;  %v2806_v36 = vld [vmem:[%s3524_s3] sm:$0xff] }
  0x1b   :  { %v78_v37 = vrot.slane %v2806_v36, %v77_v35 }
  0x1c   :  { %2254 = vmatpush3.bf16.msra.mxu1 %v2747_v15 }
  0x1d   :  { %2255 = vmatprep.subr.bf16.mxu1 %v2752_v18 }
  0x1f   :  { %2240 = vmatmul.mubr.msk.bf16.gmra.mrb[4].mxu0 %vm85_vm0, %v70_v16 }
  0x20   :  { %2243 = vmatprep.mubr.msk.bf16.mxu0 %vm85_vm0, %v71_v17  ;;  %2256 = vmatpush3.bf16.msra.mxu1 %v2752_v18 }
  0x21   :  { %2257 = vmatprep.subr.bf16.mxu1 %v2760_v21 }
  0x24   :  { %2258 = vmatpush3.bf16.msra.mxu1 %v2760_v21 }
  0x25   :  { %2259 = vmatprep.subr.bf16.mxu1 %v2772_v24 }
  0x27   :  { %2244 = vmatmul.mubr.msk.bf16.gmra.mrb[8].mxu0 %vm85_vm0, %v72_v25 }
  0x28   :  { %2247 = vmatprep.mubr.msk.bf16.mxu0 %vm85_vm0, %v73_v26  ;;  %2260 = vmatpush3.bf16.msra.mxu1 %v2772_v24 }
  0x29   :  { %2261 = vmatprep.subr.bf16.mxu1 %v2782_v29 }
  0x2c   :  { %2262 = vmatpush3.bf16.msra.mxu1 %v2782_v29 }
  0x2d   :  { %2263 = vmatprep.subr.bf16.mxu1 %v2792_v31 }
  0x2f   :  { %2248 = vmatmul.mubr.msk.bf16.gmra.mrb[12].mxu0 %vm85_vm0, %v74_v30 }
  0x30   :  { %2264 = vmatpush3.bf16.msra.mxu1 %v2792_v31 }
  0x31   :  { %2265 = vmatprep.subr.bf16.mxu1 %v2796_v32 }
  0x34   :  { %2266 = vmatpush3.bf16.msra.mxu1 %v2796_v32 }
  0xea   :  { %v2237_v38 = vpop.f32.mrb[0].mxu0 }
  0xeb   :  { %v144_v39 = vpop.f32.mrb[1].mxu0  ;;  %v2811_v42 = vadd.f32 %v2237_v38, %v78_v37 }
  0xec   :  { %v2809_v40 = vadd.f32 %v144_v39, %v78_v37  ;;  %v2238_v41 = vpop.f32.mrb[2].mxu0 }
  0xed   :  { %v2813_v43 = vadd.f32 %v2238_v41, %v78_v37  ;;  %v147_v44 = vpop.f32.mrb[3].mxu0  ;;  %v209_v49 = vmax.f32 %v2811_v42, 0.0 }
  0xee   :  { %v2815_v45 = vadd.f32 %v147_v44, %v78_v37  ;;  %v207_v47 = vmax.f32 %v2809_v40, 0.0  ;;  %v2895_v44 = vld [vmem:[#allocation2 + $0x80] sm:$0xff]  }
  0xef   :  { %v210_v46 = vmax.f32 %v2813_v43, 0.0  ;;  %2315 = vmatprep.subr.bf16.mxu1 %v2895_v44 }
  0xf0   :  { %v208_v48 = vmax.f32 %v2815_v45, 0.0 }
  0xf1   :  { %v224_v52 = vpack.c.bf16 %v210_v46, %v209_v49 }
  0xf2   :  { %v2241_v50 = vpop.f32.mrb[4].mxu0  ;;  %v223_v51 = vpack.c.bf16 %v208_v48, %v207_v47 }
  0xf3   :  { %v160_v53 = vpop.f32.mrb[5].mxu0  ;;  %v2831_v56 = vadd.f32 %v2241_v50, %v78_v37  ;;  %v2897_v50 = vld [vmem:[#allocation2 + $0x88] sm:$0xff]  }
  0xf4   :  { %v2829_v54 = vadd.f32 %v160_v53, %v78_v37  ;;  %v2242_v55 = vpop.f32.mrb[6].mxu0  ;;  %2267 = vmatprep.mubr.bf16.mxu1 %v223_v51  ;;  %v2902_v51 = vld [vmem:[#allocation2 + $0x90] sm:$0xff]   ;;  %v2910_v53 = vld [vmem:[#allocation2 + $0xa0] sm:$0xff]  }
  0xf5   :  { %v2833_v57 = vadd.f32 %v2242_v55, %v78_v37  ;;  %v163_v58 = vpop.f32.mrb[7].mxu0  ;;  %2268 = vmatmul.mubr.bf16.vlgmr.msra.gmra.mrb[0].mxu1 %v224_v52  ;;  %v213_v63 = vmax.f32 %v2831_v56, 0.0  ;;  %v2906_v52 = vld [vmem:[#allocation2 + $0x98] sm:$0xff]  }
  0xf6   :  { %v2835_v59 = vadd.f32 %v163_v58, %v78_v37  ;;  %v211_v61 = vmax.f32 %v2829_v54, 0.0  ;;  %2316 = vmatpush3.bf16.msra.mxu1 %v2895_v44 }
  0xf7   :  { %v214_v60 = vmax.f32 %v2833_v57, 0.0  ;;  %2317 = vmatprep.subr.bf16.mxu1 %v2897_v50 }
  0xf8   :  { %v212_v62 = vmax.f32 %v2835_v59, 0.0 }
  0xf9   :  { %v226_v2 = vpack.c.bf16 %v214_v60, %v213_v63 }
  0xfa   :  { %v225_v0 = vpack.c.bf16 %v212_v62, %v211_v61  ;;  %v2245_v1 = vpop.f32.mrb[8].mxu0  ;;  %2318 = vmatpush3.bf16.msra.mxu1 %v2897_v50 }
  0xfb   :  { %v176_v3 = vpop.f32.mrb[9].mxu0  ;;  %v2851_v6 = vadd.f32 %v2245_v1, %v78_v37  ;;  %2319 = vmatprep.subr.bf16.mxu1 %v2902_v51 }
  0xfc   :  { %v2849_v4 = vadd.f32 %v176_v3, %v78_v37  ;;  %v2246_v5 = vpop.f32.mrb[10].mxu0  ;;  %2271 = vmatprep.mubr.bf16.mxu1 %v225_v0 }
  0xfd   :  { %v2853_v7 = vadd.f32 %v2246_v5, %v78_v37  ;;  %v179_v8 = vpop.f32.mrb[11].mxu0  ;;  %2272 = vmatmul.mubr.bf16.gmra.mrb[4].mxu1 %v226_v2  ;;  %v3530_v13 = vmax.f32 %v2851_v6, 0.0 }
  0xfe   :  { %v2855_v9 = vadd.f32 %v179_v8, %v78_v37  ;;  %v3532_v11 = vmax.f32 %v2849_v4, 0.0  ;;  %2320 = vmatpush3.bf16.msra.mxu1 %v2902_v51 }
  0xff   :  { %v3533_v10 = vmax.f32 %v2853_v7, 0.0  ;;  %2321 = vmatprep.subr.bf16.mxu1 %v2906_v52 }
 0x100   :  { %v3531_v12 = vmax.f32 %v2855_v9, 0.0 }
 0x101   :  { %v228_v19 = vpack.c.bf16 %v3533_v10, %v3530_v13 }
 0x102   :  { %v227_v16 = vpack.c.bf16 %v3531_v12, %v3532_v11  ;;  %v2249_v17 = vpop.f32.mrb[12].mxu0  ;;  %2322 = vmatpush3.bf16.msra.mxu1 %v2906_v52 }
 0x103   :  { %v192_v20 = vpop.f32.mrb[13].mxu0  ;;  %v2871_v25 = vadd.f32 %v2249_v17, %v78_v37  ;;  %2323 = vmatprep.subr.bf16.mxu1 %v2910_v53 }
 0x104   :  { %v2869_v22 = vadd.f32 %v192_v20, %v78_v37  ;;  %v2250_v23 = vpop.f32.mrb[14].mxu0  ;;  %2275 = vmatprep.mubr.bf16.mxu1 %v227_v16 }
 0x105   :  { %v2873_v26 = vadd.f32 %v2250_v23, %v78_v37  ;;  %v195_v27 = vpop.f32.mrb[15].mxu0  ;;  %2276 = vmatmul.mubr.bf16.gmra.mrb[8].mxu1 %v228_v19  ;;  %v3526_v38 = vmax.f32 %v2871_v25, 0.0 }
 0x106   :  { %v2875_v28 = vadd.f32 %v195_v27, %v78_v37  ;;  %v3528_v33 = vmax.f32 %v2869_v22, 0.0  ;;  %v2892_v37 = vld [vmem:[%s3522_s1] sm:$0xff]   ;;  %2324 = vmatpush3.bf16.msra.mxu1 %v2910_v53 }
 0x107   :  { %v3529_v30 = vmax.f32 %v2873_v26, 0.0  ;;  %2299 = vmatprep.mubr.bf16.mxu0 %v2892_v37 }
 0x108   :  { %v3527_v35 = vmax.f32 %v2875_v28, 0.0 }
 0x109   :  { %v230_v41 = vpack.c.bf16 %v3529_v30, %v3526_v38 }
 0x10a   :  { %v229_v39 = vpack.c.bf16 %v3527_v35, %v3528_v33 }
 0x10c   :  { %2279 = vmatprep.mubr.bf16.mxu1 %v229_v39 }
 0x10d   :  { %2280 = vmatmul.mubr.bf16.gmra.mrb[12].mxu1 %v230_v41 }
 0x1c8   :  { %v2269_v55 = vpop.f32.mrb[0].mxu1 }
 0x1c9   :  { %v330_v58 = vpop.f32.mrb[1].mxu1 }
 0x1ca   :  { %v2270_v0 = vpop.f32.mrb[2].mxu1 }
 0x1cb   :  { %v394_v1 = vpack.c.bf16 %v2270_v0, %v2269_v55  ;;  %v333_v2 = vpop.f32.mrb[3].mxu1 }
 0x1cc   :  { %v393_v3 = vpack.c.bf16 %v333_v2, %v330_v58 }
 0x1ce   :  { %2283 = vmatprep.subr.bf16.mxu0 %v393_v3 }
 0x1cf   :  { %2284 = vmatpush3.bf16.msra.mxu0 %v393_v3 }
 0x1d0   :  { %v2273_v5 = vpop.f32.mrb[4].mxu1  ;;  %2285 = vmatprep.subr.bf16.mxu0 %v394_v1 }
 0x1d1   :  { %v346_v8 = vpop.f32.mrb[5].mxu1 }
 0x1d2   :  { %v2274_v16 = vpop.f32.mrb[6].mxu1 }
 0x1d3   :  { %v396_v17 = vpack.c.bf16 %v2274_v16, %v2273_v5  ;;  %v349_v19 = vpop.f32.mrb[7].mxu1  ;;  %2286 = vmatpush3.bf16.msra.mxu0 %v394_v1 }
 0x1d4   :  { %v395_v20 = vpack.c.bf16 %v349_v19, %v346_v8  ;;  %v2918_v8 = vld [vmem:[%s3522_s1 + $0x8] sm:$0xff]   ;;  %v2930_v19 = vld [vmem:[%s3522_s1 + $0x18] sm:$0xff]  }
 0x1d6   :  { %2287 = vmatprep.subr.bf16.mxu0 %v395_v20 }
 0x1d7   :  { %2288 = vmatpush3.bf16.msra.mxu0 %v395_v20  ;;  %v2935_v20 = vld [vmem:[%s3522_s1 + $0x20] sm:$0xff]  }
 0x1d8   :  { %v2277_v23 = vpop.f32.mrb[8].mxu1  ;;  %2289 = vmatprep.subr.bf16.mxu0 %v396_v17 }
 0x1d9   :  { %v362_v27 = vpop.f32.mrb[9].mxu1 }
 0x1da   :  { %v2278_v39 = vpop.f32.mrb[10].mxu1 }
 0x1db   :  { %v398_v41 = vpack.c.bf16 %v2278_v39, %v2277_v23  ;;  %v365_v55 = vpop.f32.mrb[11].mxu1  ;;  %2290 = vmatpush3.bf16.msra.mxu0 %v396_v17  ;;  %v2923_v17 = vld [vmem:[%s3522_s1 + $0x10] sm:$0xff]   ;;  %v2942_v23 = vld [vmem:[%s3522_s1 + $0x28] sm:$0xff]   ;;  %v2954_v39 = vld [vmem:[%s3522_s1 + $0x38] sm:$0xff]  }
 0x1dc   :  { %v397_v58 = vpack.c.bf16 %v365_v55, %v362_v27  ;;  %v2947_v27 = vld [vmem:[%s3522_s1 + $0x30] sm:$0xff]  }
 0x1dd   :  { %v2962_v55 = vld [vmem:[#allocation2 + $0xb0] sm:$0xff]  }
 0x1de   :  { %2291 = vmatprep.subr.bf16.mxu0 %v397_v58 }
 0x1df   :  { %2292 = vmatpush3.bf16.msra.mxu0 %v397_v58  ;;  %v2966_v58 = vld [vmem:[#allocation2 + $0xb8] sm:$0xff]  }
 0x1e0   :  { %v2281_v0 = vpop.f32.mrb[12].mxu1  ;;  %2293 = vmatprep.subr.bf16.mxu0 %v398_v41 }
 0x1e1   :  { %v378_v2 = vpop.f32.mrb[13].mxu1 }
 0x1e2   :  { %v2282_v3 = vpop.f32.mrb[14].mxu1 }
 0x1e3   :  { %v400_v5 = vpack.c.bf16 %v2282_v3, %v2281_v0  ;;  %v381_v16 = vpop.f32.mrb[15].mxu1  ;;  %2294 = vmatpush3.bf16.msra.mxu0 %v398_v41  ;;  %v2958_v41 = vld [vmem:[#allocation2 + $0xa8] sm:$0xff]   ;;  %v403_v0 = vsub.s32 1, %v2800_v34 }
 0x1e4   :  { %v399_v1 = vpack.c.bf16 %v381_v16, %v378_v2  ;;  %2325 = vmatprep.subr.bf16.mxu1 %v2958_v41 }
 0x1e5   :  { %2326 = vmatpush3.bf16.msra.mxu1 %v2958_v41  ;;  %v2973_v2 = vrot.slane %v2806_v36, %v403_v0 }
 0x1e6   :  { %2295 = vmatprep.subr.bf16.mxu0 %v399_v1  ;;  %2327 = vmatprep.subr.bf16.mxu1 %v2962_v55 }
 0x1e7   :  { %2296 = vmatpush3.bf16.msra.mxu0 %v399_v1 }
 0x1e8   :  { %2297 = vmatprep.subr.bf16.mxu0 %v400_v5 }
 0x1e9   :  { %2328 = vmatpush3.bf16.msra.mxu1 %v2962_v55 }
 0x1ea   :  { %2329 = vmatprep.subr.bf16.mxu1 %v2966_v58 }
 0x1eb   :  { %2298 = vmatpush3.bf16.msra.mxu0 %v400_v5 }
 0x1ed   :  { %2330 = vmatpush3.bf16.msra.mxu1 %v2966_v58 }
 0x1ee   :  { %2300 = vmatmul.mubr.bf16.vlgmr.msra.gmra.mrb[16].mxu0 %v2918_v8  ;;  %2379 = vmatprep.subr.bf16.mxu1 %v2745_v14 }
 0x1ef   :  { %2303 = vmatprep.mubr.bf16.mxu0 %v2923_v17 }
 0x1f6   :  { %2304 = vmatmul.mubr.bf16.gmra.mrb[20].mxu0 %v2930_v19 }
 0x1f7   :  { %2307 = vmatprep.mubr.bf16.mxu0 %v2935_v20 }
 0x1fe   :  { %2308 = vmatmul.mubr.bf16.gmra.mrb[24].mxu0 %v2942_v23 }
 0x1ff   :  { %2311 = vmatprep.mubr.bf16.mxu0 %v2947_v27 }
 0x206   :  { %2312 = vmatmul.mubr.bf16.gmra.mrb[28].mxu0 %v2954_v39 }
 0x207   :  { %2363 = vmatprep.mubr.bf16.mxu0 %v2892_v37 }
 0x2c1   :  { %v2301_v3 = vpop.f32.mrb[16].mxu0 }
 0x2c2   :  { %v496_v5 = vadd.f32 %v2301_v3, %v2973_v2  ;;  %v487_v16 = vpop.f32.mrb[17].mxu0 }
 0x2c3   :  { %v488_v1 = vadd.f32 %v487_v16, %v2973_v2  ;;  %v2302_v38 = vpop.f32.mrb[18].mxu0 }
 0x2c4   :  { %v499_v35 = vadd.f32 %v2302_v38, %v2973_v2  ;;  %v490_v33 = vpop.f32.mrb[19].mxu0  ;;  %v552_v12 = vmax.f32 %v496_v5, 0.0 }
 0x2c5   :  { %v550_v30 = vmax.f32 %v488_v1, 0.0  ;;  %v491_v13 = vadd.f32 %v490_v33, %v2973_v2 }
 0x2c6   :  { %v553_v11 = vmax.f32 %v499_v35, 0.0  ;;  %v2993_v1 = vadd.f32 %v552_v12, %v209_v49 }
 0x2c7   :  { %v551_v10 = vmax.f32 %v491_v13, 0.0  ;;  %v2985_v3 = vadd.f32 %v550_v30, %v207_v47 }
 0x2c8   :  { %v2981_v0 = vadd.f32 %v553_v11, %v210_v46 }
 0x2c9   :  { %v2989_v16 = vadd.f32 %v551_v10, %v208_v48  ;;  %v2305_v38 = vpop.f32.mrb[20].mxu0 }
 0x2ca   :  { %v512_v33 = vadd.f32 %v2305_v38, %v2973_v2  ;;  %v503_v13 = vpop.f32.mrb[21].mxu0  ;;  %v583_v47 = vpack.c.bf16 %v2981_v0, %v2993_v1 }
 0x2cb   :  { %v504_v43 = vadd.f32 %v503_v13, %v2973_v2  ;;  %v2306_v46 = vpop.f32.mrb[22].mxu0  ;;  %v582_v40 = vpack.c.bf16 %v2989_v16, %v2985_v3 }
 0x2cc   :  { %v515_v45 = vadd.f32 %v2306_v46, %v2973_v2  ;;  %v506_v48 = vpop.f32.mrb[23].mxu0  ;;  %v556_v49 = vmax.f32 %v512_v33, 0.0 }
 0x2cd   :  { %v554_v10 = vmax.f32 %v504_v43, 0.0  ;;  %v507_v42 = vadd.f32 %v506_v48, %v2973_v2  ;;  %2331 = vmatprep.mubr.bf16.mxu1 %v582_v40 }
 0x2ce   :  { %v557_v11 = vmax.f32 %v515_v45, 0.0  ;;  %2332 = vmatmul.mubr.bf16.vlgmr.msra.gmra.mrb[16].mxu1 %v583_v47  ;;  %v3019_v33 = vadd.f32 %v556_v49, %v213_v63  ;;  %v3535_v45 = vmax.f32 %v2849_v4, 0.0 }
 0x2cf   :  { %v555_v12 = vmax.f32 %v507_v42, 0.0  ;;  %2380 = vmatpush3.bf16.msra.mxu1 %v2745_v14  ;;  %v3011_v35 = vadd.f32 %v554_v10, %v211_v61  ;;  %v3536_v10 = vmax.f32 %v2855_v9, 0.0 }
 0x2d0   :  { %v3006_v30 = vadd.f32 %v557_v11, %v214_v60  ;;  %2381 = vmatprep.subr.bf16.mxu1 %v2747_v15  ;;  %v3537_v11 = vmax.f32 %v2851_v6, 0.0 }
 0x2d1   :  { %v3015_v5 = vadd.f32 %v555_v12, %v212_v62  ;;  %v2309_v38 = vpop.f32.mrb[24].mxu0 }
 0x2d2   :  { %v528_v14 = vadd.f32 %v2309_v38, %v2973_v2  ;;  %v519_v57 = vpop.f32.mrb[25].mxu0  ;;  %v585_v62 = vpack.c.bf16 %v3006_v30, %v3019_v33 }
 0x2d3   :  { %v520_v60 = vadd.f32 %v519_v57, %v2973_v2  ;;  %v2310_v13 = vpop.f32.mrb[26].mxu0  ;;  %v584_v54 = vpack.c.bf16 %v3015_v5, %v3011_v35  ;;  %2382 = vmatpush3.bf16.msra.mxu1 %v2747_v15  ;;  %v3534_v15 = vmax.f32 %v2853_v7, 0.0 }
 0x2d4   :  { %v531_v59 = vadd.f32 %v2310_v13, %v2973_v2  ;;  %v522_v61 = vpop.f32.mrb[27].mxu0  ;;  %2383 = vmatprep.subr.bf16.mxu1 %v2752_v18  ;;  %v560_v43 = vmax.f32 %v528_v14, 0.0 }
 0x2d5   :  { %v558_v56 = vmax.f32 %v520_v60, 0.0  ;;  %v523_v63 = vadd.f32 %v522_v61, %v2973_v2  ;;  %2335 = vmatprep.mubr.bf16.mxu1 %v584_v54 }
 0x2d6   :  { %v561_v46 = vmax.f32 %v531_v59, 0.0  ;;  %2336 = vmatmul.mubr.bf16.gmra.mrb[20].mxu1 %v585_v62  ;;  %v3047_v12 = vadd.f32 %v560_v43, %v3537_v11  ;;  %v3540_v43 = vmax.f32 %v2875_v28, 0.0 }
 0x2d7   :  { %v559_v40 = vmax.f32 %v523_v63, 0.0  ;;  %2384 = vmatpush3.bf16.msra.mxu1 %v2752_v18  ;;  %v3039_v48 = vadd.f32 %v558_v56, %v3535_v45  ;;  %v3539_v56 = vmax.f32 %v2869_v22, 0.0 }
 0x2d8   :  { %v3034_v47 = vadd.f32 %v561_v46, %v3534_v15  ;;  %2385 = vmatprep.subr.bf16.mxu1 %v2760_v21 }
 0x2d9   :  { %v3043_v42 = vadd.f32 %v559_v40, %v3536_v10  ;;  %v2313_v49 = vpop.f32.mrb[28].mxu0  ;;  %v3541_v40 = vmax.f32 %v2871_v25, 0.0 }
 0x2da   :  { %v544_v18 = vadd.f32 %v2313_v49, %v2973_v2  ;;  %v535_v7 = vpop.f32.mrb[29].mxu0  ;;  %v587_v60 = vpack.c.bf16 %v3034_v47, %v3047_v12 }
 0x2db   :  { %v536_v38 = vadd.f32 %v535_v7, %v2973_v2  ;;  %v2314_v14 = vpop.f32.mrb[30].mxu0  ;;  %v586_v4 = vpack.c.bf16 %v3043_v42, %v3039_v48  ;;  %2386 = vmatpush3.bf16.msra.mxu1 %v2760_v21  ;;  %v3538_v21 = vmax.f32 %v2873_v26, 0.0 }
 0x2dc   :  { %v547_v9 = vadd.f32 %v2314_v14, %v2973_v2  ;;  %v538_v57 = vpop.f32.mrb[31].mxu0  ;;  %2387 = vmatprep.subr.bf16.mxu1 %v2772_v24  ;;  %v564_v54 = vmax.f32 %v544_v18, 0.0 }
 0x2dd   :  { %v562_v6 = vmax.f32 %v536_v38, 0.0  ;;  %v539_v13 = vadd.f32 %v538_v57, %v2973_v2  ;;  %2339 = vmatprep.mubr.bf16.mxu1 %v586_v4 }
 0x2de   :  { %v565_v59 = vmax.f32 %v547_v9, 0.0  ;;  %2340 = vmatmul.mubr.bf16.gmra.mrb[24].mxu1 %v587_v60  ;;  %v3075_v15 = vadd.f32 %v564_v54, %v3541_v40 }
 0x2df   :  { %v563_v61 = vmax.f32 %v539_v13, 0.0  ;;  %2388 = vmatpush3.bf16.msra.mxu1 %v2772_v24  ;;  %v3067_v63 = vadd.f32 %v562_v6, %v3539_v56  ;;  %v762_v56 = vsub.s32 2, %v2800_v34 }
 0x2e0   :  { %v3062_v62 = vadd.f32 %v565_v59, %v3538_v21  ;;  %2389 = vmatprep.subr.bf16.mxu1 %v2782_v29 }
 0x2e1   :  { %v3071_v46 = vadd.f32 %v563_v61, %v3540_v43  ;;  %v3097_v43 = vrot.slane %v2806_v36, %v762_v56 }
 0x2e2   :  { %v589_v26 = vpack.c.bf16 %v3062_v62, %v3075_v15 }
 0x2e3   :  { %v588_v24 = vpack.c.bf16 %v3071_v46, %v3067_v63  ;;  %2390 = vmatpush3.bf16.msra.mxu1 %v2782_v29 }
 0x2e4   :  { %2391 = vmatprep.subr.bf16.mxu1 %v2792_v31 }
 0x2e5   :  { %2343 = vmatprep.mubr.bf16.mxu1 %v588_v24 }
 0x2e6   :  { %2344 = vmatmul.mubr.bf16.gmra.mrb[28].mxu1 %v589_v26 }
 0x2e7   :  { %2392 = vmatpush3.bf16.msra.mxu1 %v2792_v31 }
 0x2e8   :  { %2393 = vmatprep.subr.bf16.mxu1 %v2796_v32 }
 0x2eb   :  { %2394 = vmatpush3.bf16.msra.mxu1 %v2796_v32 }
 0x2ec   :  { %2443 = vmatprep.subr.bf16.mxu1 %v2895_v44 }
 0x3a1   :  { %v2333_v22 = vpop.f32.mrb[16].mxu1 }
 0x3a2   :  { %v689_v25 = vpop.f32.mrb[17].mxu1 }
 0x3a3   :  { %v2334_v28 = vpop.f32.mrb[18].mxu1 }
 0x3a4   :  { %v753_v45 = vpack.c.bf16 %v2334_v28, %v2333_v22  ;;  %v692_v29 = vpop.f32.mrb[19].mxu1 }
 0x3a5   :  { %v752_v10 = vpack.c.bf16 %v692_v29, %v689_v25 }
 0x3a7   :  { %2347 = vmatprep.subr.bf16.mxu0 %v752_v10 }
 0x3a8   :  { %2348 = vmatpush3.bf16.msra.mxu0 %v752_v10 }
 0x3a9   :  { %v2337_v49 = vpop.f32.mrb[20].mxu1  ;;  %2349 = vmatprep.subr.bf16.mxu0 %v753_v45 }
 0x3aa   :  { %v705_v11 = vpop.f32.mrb[21].mxu1 }
 0x3ab   :  { %v2338_v18 = vpop.f32.mrb[22].mxu1 }
 0x3ac   :  { %v755_v7 = vpack.c.bf16 %v2338_v18, %v2337_v49  ;;  %v708_v31 = vpop.f32.mrb[23].mxu1  ;;  %2350 = vmatpush3.bf16.msra.mxu0 %v753_v45 }
 0x3ad   :  { %v754_v38 = vpack.c.bf16 %v708_v31, %v705_v11 }
 0x3af   :  { %2351 = vmatprep.subr.bf16.mxu0 %v754_v38 }
 0x3b0   :  { %2352 = vmatpush3.bf16.msra.mxu0 %v754_v38 }
 0x3b1   :  { %v2341_v32 = vpop.f32.mrb[24].mxu1  ;;  %2353 = vmatprep.subr.bf16.mxu0 %v755_v7 }
 0x3b2   :  { %v721_v14 = vpop.f32.mrb[25].mxu1 }
 0x3b3   :  { %v2342_v4 = vpop.f32.mrb[26].mxu1 }
 0x3b4   :  { %v757_v9 = vpack.c.bf16 %v2342_v4, %v2341_v32  ;;  %v724_v57 = vpop.f32.mrb[27].mxu1  ;;  %2354 = vmatpush3.bf16.msra.mxu0 %v755_v7 }
 0x3b5   :  { %v756_v60 = vpack.c.bf16 %v724_v57, %v721_v14 }
 0x3b7   :  { %2355 = vmatprep.subr.bf16.mxu0 %v756_v60 }
 0x3b8   :  { %2356 = vmatpush3.bf16.msra.mxu0 %v756_v60 }
 0x3b9   :  { %v2345_v6 = vpop.f32.mrb[28].mxu1  ;;  %2357 = vmatprep.subr.bf16.mxu0 %v757_v9 }
 0x3ba   :  { %v737_v13 = vpop.f32.mrb[29].mxu1 }
 0x3bb   :  { %v2346_v54 = vpop.f32.mrb[30].mxu1 }
 0x3bc   :  { %v759_v59 = vpack.c.bf16 %v2346_v54, %v2345_v6  ;;  %v740_v61 = vpop.f32.mrb[31].mxu1  ;;  %2358 = vmatpush3.bf16.msra.mxu0 %v757_v9 }
 0x3bd   :  { %v758_v21 = vpack.c.bf16 %v740_v61, %v737_v13 }
 0x3bf   :  { %2359 = vmatprep.subr.bf16.mxu0 %v758_v21 }
 0x3c0   :  { %2360 = vmatpush3.bf16.msra.mxu0 %v758_v21 }
 0x3c1   :  { %2361 = vmatprep.subr.bf16.mxu0 %v759_v59 }
 0x3c4   :  { %2362 = vmatpush3.bf16.msra.mxu0 %v759_v59 }
 0x3c7   :  { %2364 = vmatmul.mubr.bf16.vlgmr.msra.gmra.mrb[32].mxu0 %v2918_v8 }
 0x3c8   :  { %2367 = vmatprep.mubr.bf16.mxu0 %v2923_v17 }
 0x3cf   :  { %2368 = vmatmul.mubr.bf16.gmra.mrb[36].mxu0 %v2930_v19 }
 0x3d0   :  { %2371 = vmatprep.mubr.bf16.mxu0 %v2935_v20 }
 0x3d7   :  { %2372 = vmatmul.mubr.bf16.gmra.mrb[40].mxu0 %v2942_v23 }
 0x3d8   :  { %2375 = vmatprep.mubr.bf16.mxu0 %v2947_v27 }
 0x3df   :  { %2376 = vmatmul.mubr.bf16.gmra.mrb[44].mxu0 %v2954_v39 }
 0x3e0   :  { %2427 = vmatprep.mubr.bf16.mxu0 %v2892_v37 }
 0x49a   :  { %v2365_v40 = vpop.f32.mrb[32].mxu0 }
 0x49b   :  { %v807_v24 = vadd.f32 %v2365_v40, %v3097_v43  ;;  %v798_v26 = vpop.f32.mrb[33].mxu0 }
 0x49c   :  { %v799_v22 = vadd.f32 %v798_v26, %v3097_v43  ;;  %v2366_v25 = vpop.f32.mrb[34].mxu0 }
 0x49d   :  { %v810_v28 = vadd.f32 %v2366_v25, %v3097_v43  ;;  %v801_v45 = vpop.f32.mrb[35].mxu0  ;;  %v863_v49 = vmax.f32 %v807_v24, 0.0 }
 0x49e   :  { %v861_v29 = vmax.f32 %v799_v22, 0.0  ;;  %v802_v10 = vadd.f32 %v801_v45, %v3097_v43 }
 0x49f   :  { %v864_v11 = vmax.f32 %v810_v28, 0.0  ;;  %v3113_v32 = vadd.f32 %v863_v49, %v2993_v1 }
 0x4a0   :  { %v862_v18 = vmax.f32 %v802_v10, 0.0  ;;  %v3107_v36 = vadd.f32 %v861_v29, %v2985_v3 }
 0x4a1   :  { %v3104_v7 = vadd.f32 %v864_v11, %v2981_v0 }
 0x4a2   :  { %v3110_v31 = vadd.f32 %v862_v18, %v2989_v16  ;;  %v2369_v38 = vpop.f32.mrb[36].mxu0 }
 0x4a3   :  { %v823_v14 = vadd.f32 %v2369_v38, %v3097_v43  ;;  %v814_v4 = vpop.f32.mrb[37].mxu0  ;;  %v894_v3 = vpack.c.bf16 %v3104_v7, %v3113_v32 }
 0x4a4   :  { %v815_v9 = vadd.f32 %v814_v4, %v3097_v43  ;;  %v2370_v57 = vpop.f32.mrb[38].mxu0  ;;  %v893_v0 = vpack.c.bf16 %v3110_v31, %v3107_v36 }
 0x4a5   :  { %v826_v60 = vadd.f32 %v2370_v57, %v3097_v43  ;;  %v817_v16 = vpop.f32.mrb[39].mxu0  ;;  %v867_v1 = vmax.f32 %v823_v14, 0.0 }
 0x4a6   :  { %v865_v6 = vmax.f32 %v815_v9, 0.0  ;;  %v818_v13 = vadd.f32 %v817_v16, %v3097_v43  ;;  %2395 = vmatprep.mubr.bf16.mxu1 %v893_v0 }
 0x4a7   :  { %v868_v54 = vmax.f32 %v826_v60, 0.0  ;;  %2396 = vmatmul.mubr.bf16.vlgmr.msra.gmra.mrb[32].mxu1 %v894_v3  ;;  %v3135_v24 = vadd.f32 %v867_v1, %v3019_v33 }
 0x4a8   :  { %v866_v59 = vmax.f32 %v818_v13, 0.0  ;;  %2444 = vmatpush3.bf16.msra.mxu1 %v2895_v44  ;;  %v3129_v21 = vadd.f32 %v865_v6, %v3011_v35 }
 0x4a9   :  { %v3125_v61 = vadd.f32 %v868_v54, %v3006_v30  ;;  %2445 = vmatprep.subr.bf16.mxu1 %v2897_v50 }
 0x4aa   :  { %v3132_v56 = vadd.f32 %v866_v59, %v3015_v5  ;;  %v2373_v40 = vpop.f32.mrb[40].mxu0 }
 0x4ab   :  { %v839_v26 = vadd.f32 %v2373_v40, %v3097_v43  ;;  %v830_v22 = vpop.f32.mrb[41].mxu0  ;;  %v896_v5 = vpack.c.bf16 %v3125_v61, %v3135_v24 }
 0x4ac   :  { %v831_v44 = vadd.f32 %v830_v22, %v3097_v43  ;;  %v2374_v25 = vpop.f32.mrb[42].mxu0  ;;  %v895_v30 = vpack.c.bf16 %v3132_v56, %v3129_v21  ;;  %2446 = vmatpush3.bf16.msra.mxu1 %v2897_v50 }
 0x4ad   :  { %v842_v35 = vadd.f32 %v2374_v25, %v3097_v43  ;;  %v833_v28 = vpop.f32.mrb[43].mxu0  ;;  %2447 = vmatprep.subr.bf16.mxu1 %v2902_v51  ;;  %v871_v29 = vmax.f32 %v839_v26, 0.0 }
 0x4ae   :  { %v869_v33 = vmax.f32 %v831_v44, 0.0  ;;  %v834_v45 = vadd.f32 %v833_v28, %v3097_v43  ;;  %2399 = vmatprep.mubr.bf16.mxu1 %v895_v30 }
 0x4af   :  { %v872_v10 = vmax.f32 %v842_v35, 0.0  ;;  %2400 = vmatmul.mubr.bf16.gmra.mrb[36].mxu1 %v896_v5  ;;  %v3159_v14 = vadd.f32 %v871_v29, %v3047_v12 }
 0x4b0   :  { %v870_v49 = vmax.f32 %v834_v45, 0.0  ;;  %2448 = vmatpush3.bf16.msra.mxu1 %v2902_v51  ;;  %v3153_v11 = vadd.f32 %v869_v33, %v3039_v48 }
 0x4b1   :  { %v3149_v50 = vadd.f32 %v872_v10, %v3034_v47  ;;  %2449 = vmatprep.subr.bf16.mxu1 %v2906_v52 }
 0x4b2   :  { %v3156_v18 = vadd.f32 %v870_v49, %v3043_v42  ;;  %v2377_v38 = vpop.f32.mrb[44].mxu0 }
 0x4b3   :  { %v855_v4 = vadd.f32 %v2377_v38, %v3097_v43  ;;  %v846_v9 = vpop.f32.mrb[45].mxu0  ;;  %v898_v42 = vpack.c.bf16 %v3149_v50, %v3159_v14 }
 0x4b4   :  { %v847_v51 = vadd.f32 %v846_v9, %v3097_v43  ;;  %v2378_v57 = vpop.f32.mrb[46].mxu0  ;;  %v897_v47 = vpack.c.bf16 %v3156_v18, %v3153_v11  ;;  %2450 = vmatpush3.bf16.msra.mxu1 %v2906_v52 }
 0x4b5   :  { %v858_v48 = vadd.f32 %v2378_v57, %v3097_v43  ;;  %v849_v0 = vpop.f32.mrb[47].mxu0  ;;  %2451 = vmatprep.subr.bf16.mxu1 %v2910_v53  ;;  %v875_v60 = vmax.f32 %v855_v4, 0.0 }
 0x4b6   :  { %v873_v12 = vmax.f32 %v847_v51, 0.0  ;;  %v850_v3 = vadd.f32 %v849_v0, %v3097_v43  ;;  %2403 = vmatprep.mubr.bf16.mxu1 %v897_v47 }
 0x4b7   :  { %v876_v16 = vmax.f32 %v858_v48, 0.0  ;;  %2404 = vmatmul.mubr.bf16.gmra.mrb[40].mxu1 %v898_v42  ;;  %v3183_v54 = vadd.f32 %v875_v60, %v3075_v15 }
 0x4b8   :  { %v874_v6 = vmax.f32 %v850_v3, 0.0  ;;  %2452 = vmatpush3.bf16.msra.mxu1 %v2910_v53  ;;  %v3177_v13 = vadd.f32 %v873_v12, %v3067_v63 }
 0x4b9   :  { %v3173_v52 = vadd.f32 %v876_v16, %v3062_v62  ;;  %2453 = vmatprep.subr.bf16.mxu1 %v2958_v41 }
 0x4ba   :  { %v3180_v1 = vadd.f32 %v874_v6, %v3071_v46 }
 0x4bb   :  { %v900_v53 = vpack.c.bf16 %v3173_v52, %v3183_v54 }
 0x4bc   :  { %v899_v59 = vpack.c.bf16 %v3180_v1, %v3177_v13  ;;  %2454 = vmatpush3.bf16.msra.mxu1 %v2958_v41 }
 0x4bd   :  { %2455 = vmatprep.subr.bf16.mxu1 %v2962_v55 }
 0x4be   :  { %2407 = vmatprep.mubr.bf16.mxu1 %v899_v59 }
 0x4bf   :  { %2408 = vmatmul.mubr.bf16.gmra.mrb[44].mxu1 %v900_v53 }
 0x4c0   :  { %2456 = vmatpush3.bf16.msra.mxu1 %v2962_v55 }
 0x4c1   :  { %2457 = vmatprep.subr.bf16.mxu1 %v2966_v58 }
 0x4c4   :  { %2458 = vmatpush3.bf16.msra.mxu1 %v2966_v58 }
 0x57a   :  { %v2397_v62 = vpop.f32.mrb[32].mxu1 }
 0x57b   :  { %v935_v63 = vpop.f32.mrb[33].mxu1 }
 0x57c   :  { %v2398_v46 = vpop.f32.mrb[34].mxu1 }
 0x57d   :  { %v999_v15 = vpack.c.bf16 %v2398_v46, %v2397_v62  ;;  %v938_v40 = vpop.f32.mrb[35].mxu1 }
 0x57e   :  { %v998_v26 = vpack.c.bf16 %v938_v40, %v935_v63 }
 0x580   :  { %2411 = vmatprep.subr.bf16.mxu0 %v998_v26 }
 0x581   :  { %2412 = vmatpush3.bf16.msra.mxu0 %v998_v26 }
 0x582   :  { %v2401_v41 = vpop.f32.mrb[36].mxu1  ;;  %2413 = vmatprep.subr.bf16.mxu0 %v999_v15 }
 0x583   :  { %v951_v22 = vpop.f32.mrb[37].mxu1 }
 0x584   :  { %v2402_v44 = vpop.f32.mrb[38].mxu1 }
 0x585   :  { %v1001_v25 = vpack.c.bf16 %v2402_v44, %v2401_v41  ;;  %v954_v30 = vpop.f32.mrb[39].mxu1  ;;  %2414 = vmatpush3.bf16.msra.mxu0 %v999_v15 }
 0x586   :  { %v1000_v55 = vpack.c.bf16 %v954_v30, %v951_v22 }
 0x588   :  { %2415 = vmatprep.subr.bf16.mxu0 %v1000_v55 }
 0x589   :  { %2416 = vmatpush3.bf16.msra.mxu0 %v1000_v55 }
 0x58a   :  { %v2405_v35 = vpop.f32.mrb[40].mxu1  ;;  %2417 = vmatprep.subr.bf16.mxu0 %v1001_v25 }
 0x58b   :  { %v967_v58 = vpop.f32.mrb[41].mxu1 }
 0x58c   :  { %v2406_v28 = vpop.f32.mrb[42].mxu1 }
 0x58d   :  { %v1003_v5 = vpack.c.bf16 %v2406_v28, %v2405_v35  ;;  %v970_v33 = vpop.f32.mrb[43].mxu1  ;;  %2418 = vmatpush3.bf16.msra.mxu0 %v1001_v25 }
 0x58e   :  { %v1002_v45 = vpack.c.bf16 %v970_v33, %v967_v58 }
 0x590   :  { %2419 = vmatprep.subr.bf16.mxu0 %v1002_v45 }
 0x591   :  { %2420 = vmatpush3.bf16.msra.mxu0 %v1002_v45 }
 0x592   :  { %v2409_v29 = vpop.f32.mrb[44].mxu1  ;;  %2421 = vmatprep.subr.bf16.mxu0 %v1003_v5 }
 0x593   :  { %v983_v10 = vpop.f32.mrb[45].mxu1 }
 0x594   :  { %v2410_v49 = vpop.f32.mrb[46].mxu1 }
 0x595   :  { %v1005_v38 = vpack.c.bf16 %v2410_v49, %v2409_v29  ;;  %v986_v4 = vpop.f32.mrb[47].mxu1  ;;  %2422 = vmatpush3.bf16.msra.mxu0 %v1003_v5 }
 0x596   :  { %v1004_v9 = vpack.c.bf16 %v986_v4, %v983_v10 }
 0x598   :  { %2423 = vmatprep.subr.bf16.mxu0 %v1004_v9 }
 0x599   :  { %2424 = vmatpush3.bf16.msra.mxu0 %v1004_v9 }
 0x59a   :  { %2425 = vmatprep.subr.bf16.mxu0 %v1005_v38 }
 0x59d   :  { %2426 = vmatpush3.bf16.msra.mxu0 %v1005_v38 }
 0x5a0   :  { %2428 = vmatmul.mubr.bf16.vlgmr.msra.gmra.mrb[48].mxu0 %v2918_v8 }
 0x5a1   :  { %2431 = vmatprep.mubr.bf16.mxu0 %v2923_v17 }
 0x5a8   :  { %2432 = vmatmul.mubr.bf16.gmra.mrb[52].mxu0 %v2930_v19 }
 0x5a9   :  { %2435 = vmatprep.mubr.bf16.mxu0 %v2935_v20 }
 0x5b0   :  { %2436 = vmatmul.mubr.bf16.gmra.mrb[56].mxu0 %v2942_v23 }
 0x5b1   :  { %2439 = vmatprep.mubr.bf16.mxu0 %v2947_v27 }
 0x5b8   :  { %2440 = vmatmul.mubr.bf16.gmra.mrb[60].mxu0 %v2954_v39 }
 0x5b9   :  { %2491 = vmatprep.mubr.bf16.mxu0 %v2892_v37 }
 0x673   :  { %v2429_v51 = vpop.f32.mrb[48].mxu0 }
 0x674   :  { %v1049_v57 = vadd.f32 %v2429_v51, %v2973_v2  ;;  %v1040_v47 = vpop.f32.mrb[49].mxu0 }
 0x675   :  { %v1041_v48 = vadd.f32 %v1040_v47, %v2973_v2  ;;  %v2430_v0 = vpop.f32.mrb[50].mxu0 }
 0x676   :  { %v1052_v42 = vadd.f32 %v2430_v0, %v2973_v2  ;;  %v1043_v12 = vpop.f32.mrb[51].mxu0  ;;  %v1105_v16 = vmax.f32 %v1049_v57, 0.0 }
 0x677   :  { %v1103_v3 = vmax.f32 %v1041_v48, 0.0  ;;  %v1044_v60 = vadd.f32 %v1043_v12, %v2973_v2 }
 0x678   :  { %v1106_v6 = vmax.f32 %v1052_v42, 0.0  ;;  %v3216_v46 = vadd.f32 %v1105_v16, %v3113_v32 }
 0x679   :  { %v1104_v59 = vmax.f32 %v1044_v60, 0.0  ;;  %v3210_v37 = vadd.f32 %v1103_v3, %v3107_v36 }
 0x67a   :  { %v3207_v53 = vadd.f32 %v1106_v6, %v3104_v7 }
 0x67b   :  { %v3213_v62 = vadd.f32 %v1104_v59, %v3110_v31  ;;  %v2433_v63 = vpop.f32.mrb[52].mxu0 }
 0x67c   :  { %v1065_v15 = vadd.f32 %v2433_v63, %v2973_v2  ;;  %v1056_v40 = vpop.f32.mrb[53].mxu0  ;;  %v1136_v36 = vpack.c.bf16 %v3207_v53, %v3216_v46 }
 0x67d   :  { %v1057_v26 = vadd.f32 %v1056_v40, %v2973_v2  ;;  %v2434_v41 = vpop.f32.mrb[54].mxu0  ;;  %v1135_v7 = vpack.c.bf16 %v3213_v62, %v3210_v37 }
 0x67e   :  { %v1068_v22 = vadd.f32 %v2434_v41, %v2973_v2  ;;  %v1059_v31 = vpop.f32.mrb[55].mxu0  ;;  %v1109_v32 = vmax.f32 %v1065_v15, 0.0 }
 0x67f   :  { %v1107_v44 = vmax.f32 %v1057_v26, 0.0  ;;  %v1060_v25 = vadd.f32 %v1059_v31, %v2973_v2  ;;  %2459 = vmatprep.mubr.bf16.mxu1 %v1135_v7 }
 0x680   :  { %v1110_v30 = vmax.f32 %v1068_v22, 0.0  ;;  %2460 = vmatmul.mubr.bf16.vlgmr.msra.gmra.mrb[48].mxu1 %v1136_v36  ;;  %v3236_v33 = vadd.f32 %v1109_v32, %v3135_v24 }
 0x681   :  { %v1108_v55 = vmax.f32 %v1060_v25, 0.0  ;;  %v3230_v58 = vadd.f32 %v1107_v44, %v3129_v21 }
 0x682   :  { %v3227_v35 = vadd.f32 %v1110_v30, %v3125_v61 }
 0x683   :  { %v3233_v28 = vadd.f32 %v1108_v55, %v3132_v56  ;;  %v2437_v5 = vpop.f32.mrb[56].mxu0 }
 0x684   :  { %v1081_v45 = vadd.f32 %v2437_v5, %v2973_v2  ;;  %v1072_v29 = vpop.f32.mrb[57].mxu0  ;;  %v1138_v56 = vpack.c.bf16 %v3227_v35, %v3236_v33 }
 0x685   :  { %v1073_v10 = vadd.f32 %v1072_v29, %v2973_v2  ;;  %v2438_v49 = vpop.f32.mrb[58].mxu0  ;;  %v1137_v61 = vpack.c.bf16 %v3233_v28, %v3230_v58 }
 0x686   :  { %v1084_v38 = vadd.f32 %v2438_v49, %v2973_v2  ;;  %v1075_v21 = vpop.f32.mrb[59].mxu0  ;;  %v1113_v24 = vmax.f32 %v1081_v45, 0.0 }
 0x687   :  { %v1111_v4 = vmax.f32 %v1073_v10, 0.0  ;;  %v1076_v9 = vadd.f32 %v1075_v21, %v2973_v2  ;;  %2463 = vmatprep.mubr.bf16.mxu1 %v1137_v61 }
 0x688   :  { %v1114_v51 = vmax.f32 %v1084_v38, 0.0  ;;  %2464 = vmatmul.mubr.bf16.gmra.mrb[52].mxu1 %v1138_v56  ;;  %v3256_v12 = vadd.f32 %v1113_v24, %v3159_v14 }
 0x689   :  { %v1112_v57 = vmax.f32 %v1076_v9, 0.0  ;;  %v3250_v48 = vadd.f32 %v1111_v4, %v3153_v11 }
 0x68a   :  { %v3247_v47 = vadd.f32 %v1114_v51, %v3149_v50 }
 0x68b   :  { %v3253_v0 = vadd.f32 %v1112_v57, %v3156_v18  ;;  %v2441_v42 = vpop.f32.mrb[60].mxu0 }
 0x68c   :  { %v1097_v3 = vadd.f32 %v2441_v42, %v2973_v2  ;;  %v1088_v60 = vpop.f32.mrb[61].mxu0  ;;  %v1140_v18 = vpack.c.bf16 %v3247_v47, %v3256_v12 }
 0x68d   :  { %v1089_v16 = vadd.f32 %v1088_v60, %v2973_v2  ;;  %v2442_v6 = vpop.f32.mrb[62].mxu0  ;;  %v1139_v50 = vpack.c.bf16 %v3253_v0, %v3250_v48 }
 0x68e   :  { %v1100_v59 = vadd.f32 %v2442_v6, %v2973_v2  ;;  %v1091_v11 = vpop.f32.mrb[63].mxu0  ;;  %v1117_v14 = vmax.f32 %v1097_v3, 0.0 }
 0x68f   :  { %v1115_v63 = vmax.f32 %v1089_v16, 0.0  ;;  %v1092_v15 = vadd.f32 %v1091_v11, %v2973_v2  ;;  %2467 = vmatprep.mubr.bf16.mxu1 %v1139_v50 }
 0x690   :  { %v1118_v40 = vmax.f32 %v1100_v59, 0.0  ;;  %2468 = vmatmul.mubr.bf16.gmra.mrb[56].mxu1 %v1140_v18  ;;  %v3276_v22 = vadd.f32 %v1117_v14, %v3183_v54 }
 0x691   :  { %v1116_v26 = vmax.f32 %v1092_v15, 0.0  ;;  %v3270_v7 = vadd.f32 %v1115_v63, %v3177_v13 }
 0x692   :  { %v3267_v41 = vadd.f32 %v1118_v40, %v3173_v52 }
 0x693   :  { %v3273_v36 = vadd.f32 %v1116_v26, %v3180_v1 }
 0x694   :  { %v1142_v31 = vpack.c.bf16 %v3267_v41, %v3276_v22 }
 0x695   :  { %v1141_v2 = vpack.c.bf16 %v3273_v36, %v3270_v7 }
 0x697   :  { %2471 = vmatprep.mubr.bf16.mxu1 %v1141_v2 }
 0x698   :  { %2472 = vmatmul.mubr.bf16.gmra.mrb[60].mxu1 %v1142_v31 }
 0x753   :  { %v2461_v44 = vpop.f32.mrb[48].mxu1 }
 0x754   :  { %v1177_v52 = vpop.f32.mrb[49].mxu1 }
 0x755   :  { %v2462_v25 = vpop.f32.mrb[50].mxu1 }
 0x756   :  { %v1241_v32 = vpack.c.bf16 %v2462_v25, %v2461_v44  ;;  %v1180_v13 = vpop.f32.mrb[51].mxu1 }
 0x757   :  { %v1240_v30 = vpack.c.bf16 %v1180_v13, %v1177_v52 }
 0x759   :  { %2475 = vmatprep.subr.bf16.mxu0 %v1240_v30 }
 0x75a   :  { %2476 = vmatpush3.bf16.msra.mxu0 %v1240_v30 }
 0x75b   :  { %v2465_v1 = vpop.f32.mrb[52].mxu1  ;;  %2477 = vmatprep.subr.bf16.mxu0 %v1241_v32 }
 0x75c   :  { %v1193_v54 = vpop.f32.mrb[53].mxu1 }
 0x75d   :  { %v2466_v55 = vpop.f32.mrb[54].mxu1 }
 0x75e   :  { %v1243_v5 = vpack.c.bf16 %v2466_v55, %v2465_v1  ;;  %v1196_v45 = vpop.f32.mrb[55].mxu1  ;;  %2478 = vmatpush3.bf16.msra.mxu0 %v1241_v32 }
 0x75f   :  { %v1242_v29 = vpack.c.bf16 %v1196_v45, %v1193_v54 }
 0x761   :  { %2479 = vmatprep.subr.bf16.mxu0 %v1242_v29 }
 0x762   :  { %2480 = vmatpush3.bf16.msra.mxu0 %v1242_v29 }
 0x763   :  { %v2469_v10 = vpop.f32.mrb[56].mxu1  ;;  %2481 = vmatprep.subr.bf16.mxu0 %v1243_v5 }
 0x764   :  { %v1209_v49 = vpop.f32.mrb[57].mxu1 }
 0x765   :  { %v2470_v61 = vpop.f32.mrb[58].mxu1 }
 0x766   :  { %v1245_v38 = vpack.c.bf16 %v2470_v61, %v2469_v10  ;;  %v1212_v21 = vpop.f32.mrb[59].mxu1  ;;  %2482 = vmatpush3.bf16.msra.mxu0 %v1243_v5 }
 0x767   :  { %v1244_v56 = vpack.c.bf16 %v1212_v21, %v1209_v49 }
 0x769   :  { %2483 = vmatprep.subr.bf16.mxu0 %v1244_v56 }
 0x76a   :  { %2484 = vmatpush3.bf16.msra.mxu0 %v1244_v56 }
 0x76b   :  { %v2473_v4 = vpop.f32.mrb[60].mxu1  ;;  %2485 = vmatprep.subr.bf16.mxu0 %v1245_v38 }
 0x76c   :  { %v1225_v9 = vpop.f32.mrb[61].mxu1 }
 0x76d   :  { %v2474_v24 = vpop.f32.mrb[62].mxu1 }
 0x76e   :  { %v1247_v51 = vpack.c.bf16 %v2474_v24, %v2473_v4  ;;  %v1228_v57 = vpop.f32.mrb[63].mxu1  ;;  %2486 = vmatpush3.bf16.msra.mxu0 %v1245_v38 }
 0x76f   :  { %v1246_v42 = vpack.c.bf16 %v1228_v57, %v1225_v9 }
 0x771   :  { %2487 = vmatprep.subr.bf16.mxu0 %v1246_v42 }
 0x772   :  { %2488 = vmatpush3.bf16.msra.mxu0 %v1246_v42 }
 0x773   :  { %2489 = vmatprep.subr.bf16.mxu0 %v1247_v51 }
 0x776   :  { %2490 = vmatpush3.bf16.msra.mxu0 %v1247_v51 }
 0x779   :  { %2492 = vmatmul.mubr.bf16.vlgmr.msra.gmra.mrb[64].mxu0 %v2918_v8 }
 0x77a   :  { %2495 = vmatprep.mubr.bf16.mxu0 %v2923_v17 }
 0x781   :  { %2496 = vmatmul.mubr.bf16.gmra.mrb[68].mxu0 %v2930_v19 }
 0x782   :  { %2499 = vmatprep.mubr.bf16.mxu0 %v2935_v20 }
 0x789   :  { %2500 = vmatmul.mubr.bf16.gmra.mrb[72].mxu0 %v2942_v23 }
 0x78a   :  { %2503 = vmatprep.mubr.bf16.mxu0 %v2947_v27 }
 0x791   :  { %2504 = vmatmul.mubr.bf16.gmra.mrb[76].mxu0 %v2954_v39 }
 0x84c   :  { %v2493_v3 = vpop.f32.mrb[64].mxu0 }
 0x84d   :  { %v1291_v60 = vadd.f32 %v2493_v3, %v3097_v43  ;;  %v1282_v16 = vpop.f32.mrb[65].mxu0 }
 0x84e   :  { %v1283_v6 = vadd.f32 %v1282_v16, %v3097_v43  ;;  %v2494_v50 = vpop.f32.mrb[66].mxu0 }
 0x84f   :  { %v1347_v8 = vmax.f32 %v1291_v60, 0.0  ;;  %v1294_v17 = vadd.f32 %v2494_v50, %v3097_v43  ;;  %v1285_v59 = vpop.f32.mrb[67].mxu0 }
 0x850   :  { %v1345_v19 = vmax.f32 %v1283_v6, 0.0  ;;  %v1286_v20 = vadd.f32 %v1285_v59, %v3097_v43 }
 0x851   :  { %v1348_v11 = vmax.f32 %v1294_v17, 0.0  ;;  %v3294_v23 = vadd.f32 %v1347_v8, %v3216_v46  ;;  %v1443_v8 = vsub.s32 7, %v2800_v34 }
 0x852   :  { %v1346_v27 = vmax.f32 %v1286_v20, 0.0  ;;  %v3297_v39 = vadd.f32 %v1345_v19, %v3210_v37 }
 0x853   :  { %1381 = vadd.xlane.f32.xlu1 %v3294_v23  ;;  %v3302_v15 = vadd.f32 %v1348_v11, %v3207_v53 }
 0x854   :  { %v2497_v18 = vpop.f32.mrb[68].mxu0  ;;  %1377 = vadd.xlane.f32.xlu0 %v3297_v39  ;;  %v3307_v46 = vadd.f32 %v1346_v27, %v3213_v62 }
 0x855   :  { %v1298_v63 = vpop.f32.mrb[69].mxu0  ;;  %v1307_v14 = vadd.f32 %v2497_v18, %v3097_v43 }
 0x856   :  { %v1299_v40 = vadd.f32 %v1298_v63, %v3097_v43  ;;  %v2498_v26 = vpop.f32.mrb[70].mxu0 }
 0x857   :  { %1383 = vadd.xlane.f32.xlu1 %v3302_v15  ;;  %v1301_v37 = vpop.f32.mrb[71].mxu0  ;;  %v1310_v31 = vadd.f32 %v2498_v26, %v3097_v43  ;;  %v1351_v53 = vmax.f32 %v1307_v14, 0.0 }
 0x858   :  { %v1349_v2 = vmax.f32 %v1299_v40, 0.0  ;;  %v1302_v44 = vadd.f32 %v1301_v37, %v3097_v43  ;;  %1379 = vadd.xlane.f32.xlu0 %v3307_v46 }
 0x859   :  { %v1352_v32 = vmax.f32 %v1310_v31, 0.0  ;;  %v3324_v5 = vadd.f32 %v1351_v53, %v3236_v33 }
 0x85a   :  { %v1350_v52 = vmax.f32 %v1302_v44, 0.0  ;;  %v3314_v25 = vadd.f32 %v1349_v2, %v3230_v58 }
 0x85c   :  { %v2501_v13 = vpop.f32.mrb[72].mxu0  ;;  %1385 = vadd.xlane.f32.xlu0 %v3314_v25  ;;  %v3318_v62 = vadd.f32 %v1350_v52, %v3233_v28  ;;  %v3330_v28 = vadd.f32 %v1352_v32, %v3227_v35 }
 0x85d   :  { %v1314_v30 = vpop.f32.mrb[73].mxu0  ;;  %v1323_v1 = vadd.f32 %v2501_v13, %v3097_v43 }
 0x85e   :  { %v1315_v54 = vadd.f32 %v1314_v30, %v3097_v43  ;;  %v2502_v55 = vpop.f32.mrb[74].mxu0  ;;  %1387 = vadd.xlane.f32.xlu1 %v3318_v62 }
 0x85f   :  { %v1317_v58 = vpop.f32.mrb[75].mxu0  ;;  %v1326_v29 = vadd.f32 %v2502_v55, %v3097_v43  ;;  %v1355_v49 = vmax.f32 %v1323_v1, 0.0 }
 0x860   :  { %v1353_v45 = vmax.f32 %v1315_v54, 0.0  ;;  %v1318_v10 = vadd.f32 %v1317_v58, %v3097_v43  ;;  %1389 = vadd.xlane.f32.xlu0 %v3324_v5 }
 0x861   :  { %v1356_v33 = vmax.f32 %v1326_v29, 0.0  ;;  %v3344_v51 = vadd.f32 %v1355_v49, %v3256_v12 }
 0x862   :  { %v1354_v61 = vmax.f32 %v1318_v10, 0.0  ;;  %1391 = vadd.xlane.f32.xlu1 %v3330_v28  ;;  %v3334_v38 = vadd.f32 %v1353_v45, %v3250_v48 }
 0x864   :  { %v2505_v21 = vpop.f32.mrb[76].mxu0  ;;  %1393 = vadd.xlane.f32.xlu0 %v3334_v38  ;;  %v3338_v56 = vadd.f32 %v1354_v61, %v3253_v0  ;;  %v3350_v0 = vadd.f32 %v1356_v33, %v3247_v47 }
 0x865   :  { %v1330_v4 = vpop.f32.mrb[77].mxu0  ;;  %v1339_v9 = vadd.f32 %v2505_v21, %v3097_v43 }
 0x866   :  { %v1331_v35 = vadd.f32 %v1330_v4, %v3097_v43  ;;  %v2506_v24 = vpop.f32.mrb[78].mxu0  ;;  %1395 = vadd.xlane.f32.xlu1 %v3338_v56 }
 0x867   :  { %v1333_v48 = vpop.f32.mrb[79].mxu0  ;;  %v1342_v42 = vadd.f32 %v2506_v24, %v3097_v43  ;;  %v1359_v60 = vmax.f32 %v1339_v9, 0.0 }
 0x868   :  { %v1357_v57 = vmax.f32 %v1331_v35, 0.0  ;;  %v1334_v3 = vadd.f32 %v1333_v48, %v3097_v43  ;;  %1397 = vadd.xlane.f32.xlu0 %v3344_v51 }
 0x869   :  { %v1360_v12 = vmax.f32 %v1342_v42, 0.0  ;;  %v3362_v43 = vadd.f32 %v1359_v60, %v3276_v22  ;;  %v3373_v22 = vld [vmem:[%s3524_s3] sm:$0xff] }
 0x86a   :  { %v1358_v16 = vmax.f32 %v1334_v3, 0.0  ;;  %1399 = vadd.xlane.f32.xlu1 %v3350_v0  ;;  %v3354_v6 = vadd.f32 %v1357_v57, %v3270_v7  ;;  %v2599_v7 = vld [vmem:[#allocation2 + $0xc0] sm:$0xff]   ;;  %v3376_v20 = vrot.slane %v3373_v22, %v1443_v8 }
 0x86b   :  { %v3366_v47 = vadd.f32 %v1360_v12, %v3267_v41  ;;  %2507 = vmatprep.subr.bf16.mxu1 %v2599_v7 }
 0x86c   :  { %1401 = vadd.xlane.f32.xlu0 %v3354_v6  ;;  %v3358_v50 = vadd.f32 %v1358_v16, %v3273_v36  ;;  %2508 = vmatpush3.bf16.msra.mxu1 %v2599_v7 }
 0x86e   :  { %1403 = vadd.xlane.f32.xlu1 %v3358_v50 }
 0x870   :  { %1405 = vadd.xlane.f32.xlu0 %v3362_v43 }
 0x872   :  { %1407 = vadd.xlane.f32.xlu1 %v3366_v47 }
 0x8e0   :  { %v1382_v17 = vpop.xlane.xlu1 %1381 }
 0x8e1   :  { %v1411_v36 = vmul.f32 0.03125, %v1382_v17  ;;  %v1378_v59 = vpop.xlane.xlu0 %1377 }
 0x8e2   :  { %v1409_v19 = vmul.f32 0.03125, %v1378_v59 }
 0x8e3   :  { %v3379_v41 = vsub.f32 %v3294_v23, %v1411_v36  ;;  %v2600_v36 = vld [vmem:[#allocation2 + $0xc8] sm:$0xff]  }
 0x8e4   :  { %v3382_v11 = vsub.f32 %v3297_v39, %v1409_v19  ;;  %v1384_v27 = vpop.xlane.xlu1 %1383  ;;  %2509 = vmatprep.subr.bf16.mxu1 %v2600_v36 }
 0x8e5   :  { %v1412_v18 = vmul.f32 0.03125, %v1384_v27  ;;  %v1380_v63 = vpop.xlane.xlu0 %1379  ;;  %v1447_v23 = vmul.f32 %v3376_v20, %v3379_v41  ;;  %2510 = vmatpush3.bf16.msra.mxu1 %v2600_v36 }
 0x8e6   :  { %v1410_v14 = vmul.f32 0.03125, %v1380_v63  ;;  %v1445_v40 = vmul.f32 %v3376_v20, %v3382_v11 }
 0x8e7   :  { %v3387_v26 = vsub.f32 %v3302_v15, %v1412_v18 }
 0x8e8   :  { %v3390_v37 = vsub.f32 %v3307_v46, %v1410_v14  ;;  %v1461_v2 = vmul.f32 %v1445_v40, %v1445_v40  ;;  %v1463_v46 = vmul.f32 %v1447_v23, %v1447_v23 }
 0x8e9   :  { %v1386_v31 = vpop.xlane.xlu0 %1385  ;;  %v1448_v52 = vmul.f32 %v3376_v20, %v3387_v26 }
 0x8ea   :  { %v1413_v39 = vmul.f32 0.03125, %v1386_v31  ;;  %1477 = vadd.xlane.f32.xlu0 %v1461_v2  ;;  %v1446_v44 = vmul.f32 %v3376_v20, %v3390_v37 }
 0x8eb   :  { %v1388_v53 = vpop.xlane.xlu1 %1387  ;;  %v1464_v45 = vmul.f32 %v1448_v52, %v1448_v52 }
 0x8ec   :  { %v3399_v15 = vsub.f32 %v3314_v25, %v1413_v39  ;;  %v1414_v32 = vmul.f32 0.03125, %v1388_v53  ;;  %v1462_v13 = vmul.f32 %v1446_v44, %v1446_v44  ;;  %v2601_v39 = vld [vmem:[#allocation2 + $0xd0] sm:$0xff]  }
 0x8ed   :  { %v1390_v30 = vpop.xlane.xlu0 %1389  ;;  %2511 = vmatprep.subr.bf16.mxu1 %v2601_v39 }
 0x8ee   :  { %v3402_v1 = vsub.f32 %v3318_v62, %v1414_v32  ;;  %v1415_v54 = vmul.f32 0.03125, %v1390_v30  ;;  %1481 = vadd.xlane.f32.xlu0 %v1463_v46  ;;  %1479 = vadd.xlane.f32.xlu1 %v1462_v13  ;;  %v1449_v55 = vmul.f32 %v3376_v20, %v3399_v15  ;;  %v2602_v30 = vld [vmem:[#allocation2 + $0xd8] sm:$0xff]  }
 0x8ef   :  { %v1392_v58 = vpop.xlane.xlu1 %1391  ;;  %2512 = vmatpush3.bf16.msra.mxu1 %v2601_v39 }
 0x8f0   :  { %v3407_v29 = vsub.f32 %v3324_v5, %v1415_v54  ;;  %v1416_v25 = vmul.f32 0.03125, %v1392_v58  ;;  %v1465_v10 = vmul.f32 %v1449_v55, %v1449_v55  ;;  %v1450_v49 = vmul.f32 %v3376_v20, %v3402_v1  ;;  %2513 = vmatprep.subr.bf16.mxu1 %v2602_v30  ;;  %v2603_v58 = vld [vmem:[#allocation2 + $0xe0] sm:$0xff]  }
 0x8f1   :  { %v1394_v61 = vpop.xlane.xlu0 %1393 }
 0x8f2   :  { %v3412_v62 = vsub.f32 %v3330_v28, %v1416_v25  ;;  %v1417_v33 = vmul.f32 0.03125, %v1394_v61  ;;  %1483 = vadd.xlane.f32.xlu1 %v1464_v45  ;;  %1485 = vadd.xlane.f32.xlu0 %v1465_v10  ;;  %v1451_v21 = vmul.f32 %v3376_v20, %v3407_v29  ;;  %v1466_v9 = vmul.f32 %v1450_v49, %v1450_v49  ;;  %v2605_v25 = vld [vmem:[#allocation2 + $0xf0] sm:$0xff]   ;;  %v2606_v10 = vld [vmem:[#allocation2 + $0xf8] sm:$0xff]   ;;  %v2607_v49 = vld [vmem:[#allocation2 + $0x100] sm:$0xff]  }
 0x8f3   :  { %v1396_v4 = vpop.xlane.xlu1 %1395  ;;  %2514 = vmatpush3.bf16.msra.mxu1 %v2602_v30  ;;  %2539 = vmatprep.subr.bf16.mxu0 %v2607_v49  ;;  %v2609_v61 = vld [vmem:[#allocation2 + $0x110] sm:$0xff]  }
 0x8f4   :  { %v3417_v5 = vsub.f32 %v3334_v38, %v1417_v33  ;;  %v1418_v35 = vmul.f32 0.03125, %v1396_v4  ;;  %v1467_v24 = vmul.f32 %v1451_v21, %v1451_v21  ;;  %v1452_v48 = vmul.f32 %v3376_v20, %v3412_v62  ;;  %2515 = vmatprep.subr.bf16.mxu1 %v2603_v58  ;;  %2540 = vmatpush3.bf16.msra.mxu0 %v2607_v49  ;;  %v2610_v33 = vld [vmem:[#allocation2 + $0x118] sm:$0xff]   ;;  %v2611_v21 = vld [vmem:[#allocation2 + $0x120] sm:$0xff]   ;;  %v2612_v4 = vld [vmem:[#allocation2 + $0x128] sm:$0xff]  }
 0x8f5   :  { %v1398_v57 = vpop.xlane.xlu0 %1397 }
 0x8f6   :  { %v3422_v28 = vsub.f32 %v3338_v56, %v1418_v35  ;;  %v1419_v42 = vmul.f32 0.03125, %v1398_v57  ;;  %1487 = vadd.xlane.f32.xlu1 %v1466_v9  ;;  %1489 = vadd.xlane.f32.xlu0 %v1467_v24  ;;  %v1453_v3 = vmul.f32 %v3376_v20, %v3417_v5  ;;  %v1468_v16 = vmul.f32 %v1452_v48, %v1452_v48 }
 0x8f7   :  { %v1400_v60 = vpop.xlane.xlu1 %1399  ;;  %2516 = vmatpush3.bf16.msra.mxu1 %v2603_v58 }
 0x8f8   :  { %v3427_v38 = vsub.f32 %v3344_v51, %v1419_v42  ;;  %v1420_v12 = vmul.f32 0.03125, %v1400_v60  ;;  %v1469_v7 = vmul.f32 %v1453_v3, %v1453_v3  ;;  %v1454_v8 = vmul.f32 %v3376_v20, %v3422_v28 }
 0x8f9   :  { %v1402_v17 = vpop.xlane.xlu0 %1401 }
 0x8fa   :  { %v3432_v56 = vsub.f32 %v3350_v0, %v1420_v12  ;;  %v1421_v59 = vmul.f32 0.03125, %v1402_v17  ;;  %1491 = vadd.xlane.f32.xlu1 %v1468_v16  ;;  %1493 = vadd.xlane.f32.xlu0 %v1469_v7  ;;  %v1455_v19 = vmul.f32 %v3376_v20, %v3427_v38  ;;  %v1470_v18 = vmul.f32 %v1454_v8, %v1454_v8 }
 0x8fb   :  { %v1404_v27 = vpop.xlane.xlu1 %1403 }
 0x8fc   :  { %v3437_v51 = vsub.f32 %v3354_v6, %v1421_v59  ;;  %v1422_v63 = vmul.f32 0.03125, %v1404_v27  ;;  %v1471_v14 = vmul.f32 %v1455_v19, %v1455_v19  ;;  %v1456_v40 = vmul.f32 %v3376_v20, %v3432_v56 }
 0x8fd   :  { %v1406_v0 = vpop.xlane.xlu0 %1405  ;;  %v1575_v19 = vsub.s32 3, %v2800_v34 }
 0x8fe   :  { %v3442_v2 = vsub.f32 %v3358_v50, %v1422_v63  ;;  %v1423_v23 = vmul.f32 0.03125, %v1406_v0  ;;  %1495 = vadd.xlane.f32.xlu1 %v1470_v18  ;;  %1497 = vadd.xlane.f32.xlu0 %v1471_v14  ;;  %v1457_v31 = vmul.f32 %v3376_v20, %v3437_v51  ;;  %v1472_v6 = vmul.f32 %v1456_v40, %v1456_v40 }
 0x8ff   :  { %v1408_v44 = vpop.xlane.xlu1 %1407 }
 0x900   :  { %v3447_v53 = vsub.f32 %v3362_v43, %v1423_v23  ;;  %v1424_v52 = vmul.f32 0.03125, %v1408_v44  ;;  %v1473_v32 = vmul.f32 %v1457_v31, %v1457_v31  ;;  %v1458_v46 = vmul.f32 %v3376_v20, %v3442_v2 }
 0x901   :  { %v3460_v31 = vrot.slane %v3373_v22, %v1575_v19 }
 0x902   :  { %v3452_v50 = vsub.f32 %v3366_v47, %v1424_v52  ;;  %1499 = vadd.xlane.f32.xlu1 %v1472_v6  ;;  %1501 = vadd.xlane.f32.xlu0 %v1473_v32  ;;  %v1459_v13 = vmul.f32 %v3376_v20, %v3447_v53  ;;  %v1474_v54 = vmul.f32 %v1458_v46, %v1458_v46  ;;  %v2604_v47 = vld [vmem:[#allocation2 + $0xe8] sm:$0xff]   ;;  %v1595_v52 = vsub.s32 4, %v2800_v34 }
 0x903   :  { %2517 = vmatprep.subr.bf16.mxu1 %v2604_v47 }
 0x904   :  { %v1475_v55 = vmul.f32 %v1459_v13, %v1459_v13  ;;  %v1460_v43 = vmul.f32 %v3376_v20, %v3452_v50  ;;  %2518 = vmatpush3.bf16.msra.mxu1 %v2604_v47  ;;  %v2608_v20 = vld [vmem:[#allocation2 + $0x108] sm:$0xff]  }
 0x905   :  { %2519 = vmatprep.subr.bf16.mxu1 %v2605_v25  ;;  %2541 = vmatprep.subr.bf16.mxu0 %v2608_v20 }
 0x906   :  { %1503 = vadd.xlane.f32.xlu1 %v1474_v54  ;;  %1505 = vadd.xlane.f32.xlu0 %v1475_v55  ;;  %v1476_v45 = vmul.f32 %v1460_v43, %v1460_v43 }
 0x907   :  { %2542 = vmatpush3.bf16.msra.mxu0 %v2608_v20 }
 0x908   :  { %2520 = vmatpush3.bf16.msra.mxu1 %v2605_v25  ;;  %2543 = vmatprep.subr.bf16.mxu0 %v2609_v61  ;;  %v3467_v25 = vrot.slane %v3373_v22, %v1595_v52 }
 0x909   :  { %2521 = vmatprep.subr.bf16.mxu1 %v2606_v10 }
 0x90a   :  { %1507 = vadd.xlane.f32.xlu1 %v1476_v45 }
 0x90b   :  { %2544 = vmatpush3.bf16.msra.mxu0 %v2609_v61 }
 0x90c   :  { %2522 = vmatpush3.bf16.msra.mxu1 %v2606_v10  ;;  %2545 = vmatprep.subr.bf16.mxu0 %v2610_v33 }
 0x90f   :  { %2546 = vmatpush3.bf16.msra.mxu0 %v2610_v33 }
 0x910   :  { %2547 = vmatprep.subr.bf16.mxu0 %v2611_v21 }
 0x913   :  { %2548 = vmatpush3.bf16.msra.mxu0 %v2611_v21 }
 0x914   :  { %2549 = vmatprep.subr.bf16.mxu0 %v2612_v4 }
 0x917   :  { %2550 = vmatpush3.bf16.msra.mxu0 %v2612_v4 }
 0x977   :  { %v1478_v9 = vpop.xlane.xlu0 %1477 }
 0x978   :  { %v1509_v35 = vmul.f32 0.03125, %v1478_v9 }
 0x97a   :  { %v1525_v24 = vadd.f32 1e-05, %v1509_v35 }
 0x97b   :  { %v1480_v48 = vpop.xlane.xlu1 %1479  ;;  %v1482_v57 = vpop.xlane.xlu0 %1481 }
 0x97c   :  { %2615 = vrsqrt.f32 %v1525_v24  ;;  %v1510_v42 = vmul.f32 0.03125, %v1480_v48  ;;  %v1511_v3 = vmul.f32 0.03125, %v1482_v57 }
 0x97e   :  { %v1526_v60 = vadd.f32 1e-05, %v1510_v42  ;;  %v1527_v16 = vadd.f32 1e-05, %v1511_v3 }
 0x97f   :  { %v1484_v12 = vpop.xlane.xlu1 %1483  ;;  %v1486_v7 = vpop.xlane.xlu0 %1485 }
 0x980   :  { %2617 = vrsqrt.f32 %v1526_v60  ;;  %v1512_v8 = vmul.f32 0.03125, %v1484_v12  ;;  %v1513_v17 = vmul.f32 0.03125, %v1486_v7 }
 0x981   :  { %2619 = vrsqrt.f32 %v1527_v16 }
 0x982   :  { %v1528_v36 = vadd.f32 1e-05, %v1512_v8  ;;  %v1529_v59 = vadd.f32 1e-05, %v1513_v17 }
 0x983   :  { %v1488_v27 = vpop.xlane.xlu1 %1487  ;;  %v1490_v18 = vpop.xlane.xlu0 %1489 }
 0x984   :  { %2621 = vrsqrt.f32 %v1528_v36  ;;  %v1514_v63 = vmul.f32 0.03125, %v1488_v27  ;;  %v1515_v14 = vmul.f32 0.03125, %v1490_v18 }
 0x985   :  { %2623 = vrsqrt.f32 %v1529_v59 }
 0x986   :  { %v2616_v40 = vpop.eup %2615  ;;  %v1530_v0 = vadd.f32 1e-05, %v1514_v63  ;;  %v1531_v23 = vadd.f32 1e-05, %v1515_v14 }
 0x987   :  { %v1492_v39 = vpop.xlane.xlu1 %1491  ;;  %v1494_v44 = vpop.xlane.xlu0 %1493  ;;  %v1557_v6 = vmul.f32 %v2616_v40, %v3382_v11 }
 0x988   :  { %2625 = vrsqrt.f32 %v1530_v0  ;;  %v1516_v32 = vmul.f32 0.03125, %v1492_v39  ;;  %v1517_v46 = vmul.f32 0.03125, %v1494_v44 }
 0x989   :  { %2627 = vrsqrt.f32 %v1531_v23  ;;  %v1577_v47 = vmul.f32 %v3460_v31, %v1557_v6 }
 0x98a   :  { %v2618_v13 = vpop.eup %2617  ;;  %v1532_v30 = vadd.f32 1e-05, %v1516_v32  ;;  %v1533_v54 = vadd.f32 1e-05, %v1517_v46 }
 0x98b   :  { %v2620_v55 = vpop.eup %2619  ;;  %v1496_v43 = vpop.xlane.xlu1 %1495  ;;  %v1558_v45 = vmul.f32 %v2618_v13, %v3390_v37  ;;  %v1597_v48 = vadd.f32 %v3467_v25, %v1577_v47 }
 0x98c   :  { %v1498_v58 = vpop.xlane.xlu0 %1497  ;;  %v1559_v11 = vmul.f32 %v2620_v55, %v3379_v41  ;;  %2629 = vrsqrt.f32 %v1532_v30  ;;  %v1518_v10 = vmul.f32 0.03125, %v1496_v43 }
 0x98d   :  { %v1519_v49 = vmul.f32 0.03125, %v1498_v58  ;;  %2631 = vrsqrt.f32 %v1533_v54  ;;  %v1578_v20 = vmul.f32 %v3460_v31, %v1558_v45 }
 0x98e   :  { %v2622_v61 = vpop.eup %2621  ;;  %v1534_v33 = vadd.f32 1e-05, %v1518_v10  ;;  %v1579_v9 = vmul.f32 %v3460_v31, %v1559_v11 }
 0x98f   :  { %v1535_v21 = vadd.f32 1e-05, %v1519_v49  ;;  %v2624_v4 = vpop.eup %2623  ;;  %v1560_v37 = vmul.f32 %v2622_v61, %v3387_v26  ;;  %v1500_v35 = vpop.xlane.xlu1 %1499  ;;  %v1598_v41 = vadd.f32 %v3467_v25, %v1578_v20 }
 0x990   :  { %v1502_v24 = vpop.xlane.xlu0 %1501  ;;  %2633 = vrsqrt.f32 %v1534_v33  ;;  %v1520_v57 = vmul.f32 0.03125, %v1500_v35  ;;  %v1561_v16 = vmul.f32 %v2624_v4, %v3399_v15  ;;  %v1599_v59 = vadd.f32 %v3467_v25, %v1579_v9 }
 0x991   :  { %v1521_v42 = vmul.f32 0.03125, %v1502_v24  ;;  %v1580_v3 = vmul.f32 %v3460_v31, %v1560_v37  ;;  %2635 = vrsqrt.f32 %v1535_v21  ;;  %v1613_v60 = vpack.c.bf16 %v1598_v41, %v1597_v48 }
 0x992   :  { %v2626_v12 = vpop.eup %2625  ;;  %v1536_v7 = vadd.f32 1e-05, %v1520_v57  ;;  %v1581_v18 = vmul.f32 %v3460_v31, %v1561_v16 }
 0x993   :  { %v1537_v8 = vadd.f32 1e-05, %v1521_v42  ;;  %v2628_v17 = vpop.eup %2627  ;;  %v1504_v26 = vpop.xlane.xlu1 %1503  ;;  %2523 = vmatprep.mubr.bf16.mxu1 %v1613_v60  ;;  %v1600_v19 = vadd.f32 %v3467_v25, %v1580_v3  ;;  %v1562_v27 = vmul.f32 %v2626_v12, %v3402_v1 }
 0x994   :  { %v1506_v36 = vpop.xlane.xlu0 %1505  ;;  %2637 = vrsqrt.f32 %v1536_v7  ;;  %v1522_v63 = vmul.f32 0.03125, %v1504_v26  ;;  %v1563_v15 = vmul.f32 %v2628_v17, %v3407_v29  ;;  %v1601_v32 = vadd.f32 %v3467_v25, %v1581_v18 }
 0x995   :  { %v1523_v14 = vmul.f32 0.03125, %v1506_v36  ;;  %2639 = vrsqrt.f32 %v1537_v8  ;;  %v1614_v40 = vpack.c.bf16 %v1600_v19, %v1599_v59  ;;  %v1582_v0 = vmul.f32 %v3460_v31, %v1562_v27  ;;  %v2613_v19 = vld [vmem:[#allocation2 + $0x130] sm:$0xff]   ;;  %v2614_v27 = vld [vmem:[#allocation2 + $0x138] sm:$0xff]  }
 0x996   :  { %v2630_v23 = vpop.eup %2629  ;;  %v1538_v39 = vadd.f32 1e-05, %v1522_v63  ;;  %v1583_v13 = vmul.f32 %v3460_v31, %v1563_v15  ;;  %2551 = vmatprep.subr.bf16.mxu0 %v2613_v19 }
 0x997   :  { %v1539_v44 = vadd.f32 1e-05, %v1523_v14  ;;  %v2632_v6 = vpop.eup %2631  ;;  %v1508_v52 = vpop.xlane.xlu1 %1507  ;;  %2524 = vmatmul.mubr.bf16.vlgmr.msra.gmra.mrb[64].mxu1 %v1614_v40  ;;  %v1602_v1 = vadd.f32 %v3467_v25, %v1582_v0  ;;  %v1564_v46 = vmul.f32 %v2630_v23, %v3412_v62  ;;  %2552 = vmatpush3.bf16.msra.mxu0 %v2613_v19 }
 0x998   :  { %2641 = vrsqrt.f32 %v1538_v39  ;;  %v1524_v29 = vmul.f32 0.03125, %v1508_v52  ;;  %v1565_v30 = vmul.f32 %v2632_v6, %v3417_v5  ;;  %v1603_v47 = vadd.f32 %v3467_v25, %v1583_v13  ;;  %2553 = vmatprep.subr.bf16.mxu0 %v2614_v27 }
 0x999   :  { %2643 = vrsqrt.f32 %v1539_v44  ;;  %v1615_v54 = vpack.c.bf16 %v1602_v1, %v1601_v32  ;;  %v1584_v55 = vmul.f32 %v3460_v31, %v1564_v46 }
 0x99a   :  { %v2634_v43 = vpop.eup %2633  ;;  %v1540_v58 = vadd.f32 1e-05, %v1524_v29  ;;  %v1585_v10 = vmul.f32 %v3460_v31, %v1565_v30 }
 0x99b   :  { %v2636_v45 = vpop.eup %2635  ;;  %2527 = vmatprep.mubr.bf16.mxu1 %v1615_v54  ;;  %v1604_v11 = vadd.f32 %v3467_v25, %v1584_v55  ;;  %v1566_v62 = vmul.f32 %v2634_v43, %v3422_v28  ;;  %2554 = vmatpush3.bf16.msra.mxu0 %v2614_v27 }
 0x99c   :  { %2645 = vrsqrt.f32 %v1540_v58  ;;  %v1567_v49 = vmul.f32 %v2636_v45, %v3427_v38  ;;  %v1605_v21 = vadd.f32 %v3467_v25, %v1585_v10 }
 0x99d   :  { %v1616_v5 = vpack.c.bf16 %v1604_v11, %v1603_v47  ;;  %v1586_v20 = vmul.f32 %v3460_v31, %v1566_v62 }
 0x99e   :  { %v2638_v61 = vpop.eup %2637  ;;  %v1587_v37 = vmul.f32 %v3460_v31, %v1567_v49 }
 0x99f   :  { %v2640_v33 = vpop.eup %2639  ;;  %2528 = vmatmul.mubr.bf16.gmra.mrb[68].mxu1 %v1616_v5  ;;  %v1606_v4 = vadd.f32 %v3467_v25, %v1586_v20  ;;  %v1568_v9 = vmul.f32 %v2638_v61, %v3432_v56 }
 0x9a0   :  { %v1569_v28 = vmul.f32 %v2640_v33, %v3437_v51  ;;  %v1607_v41 = vadd.f32 %v3467_v25, %v1587_v37 }
 0x9a1   :  { %v1617_v35 = vpack.c.bf16 %v1606_v4, %v1605_v21  ;;  %v1588_v24 = vmul.f32 %v3460_v31, %v1568_v9 }
 0x9a2   :  { %v2642_v38 = vpop.eup %2641  ;;  %v1589_v3 = vmul.f32 %v3460_v31, %v1569_v28 }
 0x9a3   :  { %v2644_v48 = vpop.eup %2643  ;;  %2531 = vmatprep.mubr.bf16.mxu1 %v1617_v35  ;;  %v1608_v57 = vadd.f32 %v3467_v25, %v1588_v24  ;;  %v1570_v42 = vmul.f32 %v2642_v38, %v3442_v2 }
 0x9a4   :  { %v1571_v56 = vmul.f32 %v2644_v48, %v3447_v53  ;;  %v1609_v12 = vadd.f32 %v3467_v25, %v1589_v3 }
 0x9a5   :  { %v1618_v60 = vpack.c.bf16 %v1608_v57, %v1607_v41  ;;  %v1590_v16 = vmul.f32 %v3460_v31, %v1570_v42 }
 0x9a6   :  { %v2646_v51 = vpop.eup %2645  ;;  %v1591_v17 = vmul.f32 %v3460_v31, %v1571_v56 }
 0x9a7   :  { %2532 = vmatmul.mubr.bf16.gmra.mrb[72].mxu1 %v1618_v60  ;;  %v1610_v7 = vadd.f32 %v3467_v25, %v1590_v16  ;;  %v1572_v8 = vmul.f32 %v2646_v51, %v3452_v50  ;;  %v1640_v50 = vsub.s32 5, %v2800_v34 }
 0x9a8   :  { %v1611_v36 = vadd.f32 %v3467_v25, %v1591_v17 }
 0x9a9   :  { %v1619_v26 = vpack.c.bf16 %v1610_v7, %v1609_v12  ;;  %v1592_v2 = vmul.f32 %v3460_v31, %v1572_v8  ;;  %v1641_v18 = vrot.slane %v3373_v22, %v1640_v50 }
 0x9ab   :  { %2535 = vmatprep.mubr.bf16.mxu1 %v1619_v26  ;;  %v1612_v53 = vadd.f32 %v3467_v25, %v1592_v2 }
 0x9ad   :  { %v1620_v59 = vpack.c.bf16 %v1612_v53, %v1611_v36  ;;  %v1830_v53 = vsub.s32 6, %v2800_v34 }
 0x9af   :  { %2536 = vmatmul.mubr.bf16.gmra.mrb[76].mxu1 %v1620_v59  ;;  %v1831_v59 = vrot.slane %v3373_v22, %v1830_v53 }
 0xa6a   :  { %v2525_v63 = vpop.f32.mrb[64].mxu1 }
 0xa6b   :  { %v1733_v14 = vadd.f32 %v2525_v63, %v1641_v18  ;;  %v1724_v31 = vpop.f32.mrb[65].mxu1 }
 0xa6c   :  { %v1725_v15 = vadd.f32 %v1724_v31, %v1641_v18  ;;  %v2526_v40 = vpop.f32.mrb[66].mxu1 }
 0xa6d   :  { %v1736_v0 = vadd.f32 %v2526_v40, %v1641_v18  ;;  %v1727_v23 = vpop.f32.mrb[67].mxu1  ;;  %v1789_v39 = vmax.f32 %v1733_v14, 0.0 }
 0xa6e   :  { %v1728_v25 = vadd.f32 %v1727_v23, %v1641_v18  ;;  %v1787_v6 = vmax.f32 %v1725_v15, 0.0 }
 0xa6f   :  { %v1790_v44 = vmax.f32 %v1736_v0, 0.0 }
 0xa70   :  { %v1788_v52 = vmax.f32 %v1728_v25, 0.0 }
 0xa71   :  { %v1804_v32 = vpack.c.bf16 %v1790_v44, %v1789_v39 }
 0xa72   :  { %v1803_v1 = vpack.c.bf16 %v1788_v52, %v1787_v6  ;;  %v2529_v46 = vpop.f32.mrb[68].mxu1 }
 0xa73   :  { %v1749_v13 = vadd.f32 %v2529_v46, %v1641_v18  ;;  %v1740_v29 = vpop.f32.mrb[69].mxu1 }
 0xa74   :  { %v1741_v30 = vadd.f32 %v1740_v29, %v1641_v18  ;;  %v2530_v54 = vpop.f32.mrb[70].mxu1  ;;  %2555 = vmatprep.mubr.bf16.mxu0 %v1803_v1 }
 0xa75   :  { %v1752_v55 = vadd.f32 %v2530_v54, %v1641_v18  ;;  %v1743_v43 = vpop.f32.mrb[71].mxu1  ;;  %2556 = vmatmul.mubr.bf16.vlgmr.msra.gmra.mrb[80].mxu0 %v1804_v32  ;;  %v1793_v45 = vmax.f32 %v1749_v13, 0.0 }
 0xa76   :  { %v1744_v58 = vadd.f32 %v1743_v43, %v1641_v18  ;;  %v1791_v11 = vmax.f32 %v1741_v30, 0.0 }
 0xa77   :  { %v1794_v47 = vmax.f32 %v1752_v55, 0.0 }
 0xa78   :  { %v1792_v62 = vmax.f32 %v1744_v58, 0.0 }
 0xa79   :  { %v1806_v10 = vpack.c.bf16 %v1794_v47, %v1793_v45 }
 0xa7a   :  { %v1805_v49 = vpack.c.bf16 %v1792_v62, %v1791_v11  ;;  %v2533_v5 = vpop.f32.mrb[72].mxu1 }
 0xa7b   :  { %v1765_v20 = vadd.f32 %v2533_v5, %v1641_v18  ;;  %v1756_v61 = vpop.f32.mrb[73].mxu1 }
 0xa7c   :  { %v1757_v33 = vadd.f32 %v1756_v61, %v1641_v18  ;;  %v2534_v21 = vpop.f32.mrb[74].mxu1  ;;  %2559 = vmatprep.mubr.bf16.mxu0 %v1805_v49 }
 0xa7d   :  { %v1768_v4 = vadd.f32 %v2534_v21, %v1641_v18  ;;  %v1759_v9 = vpop.f32.mrb[75].mxu1  ;;  %2560 = vmatmul.mubr.bf16.gmra.mrb[84].mxu0 %v1806_v10  ;;  %v1797_v28 = vmax.f32 %v1765_v20, 0.0 }
 0xa7e   :  { %v1760_v37 = vadd.f32 %v1759_v9, %v1641_v18  ;;  %v1795_v24 = vmax.f32 %v1757_v33, 0.0 }
 0xa7f   :  { %v1798_v35 = vmax.f32 %v1768_v4, 0.0 }
 0xa80   :  { %v1796_v38 = vmax.f32 %v1760_v37, 0.0 }
 0xa81   :  { %v1808_v48 = vpack.c.bf16 %v1798_v35, %v1797_v28 }
 0xa82   :  { %v1807_v41 = vpack.c.bf16 %v1796_v38, %v1795_v24  ;;  %v2537_v57 = vpop.f32.mrb[76].mxu1 }
 0xa83   :  { %v1781_v42 = vadd.f32 %v2537_v57, %v1641_v18  ;;  %v1772_v3 = vpop.f32.mrb[77].mxu1 }
 0xa84   :  { %v1773_v56 = vadd.f32 %v1772_v3, %v1641_v18  ;;  %v2538_v60 = vpop.f32.mrb[78].mxu1  ;;  %2563 = vmatprep.mubr.bf16.mxu0 %v1807_v41 }
 0xa85   :  { %v1784_v16 = vadd.f32 %v2538_v60, %v1641_v18  ;;  %v1775_v51 = vpop.f32.mrb[79].mxu1  ;;  %2564 = vmatmul.mubr.bf16.gmra.mrb[88].mxu0 %v1808_v48  ;;  %v1801_v7 = vmax.f32 %v1781_v42, 0.0 }
 0xa86   :  { %v1776_v12 = vadd.f32 %v1775_v51, %v1641_v18  ;;  %v1799_v17 = vmax.f32 %v1773_v56, 0.0 }
 0xa87   :  { %v1802_v8 = vmax.f32 %v1784_v16, 0.0 }
 0xa88   :  { %v1800_v26 = vmax.f32 %v1776_v12, 0.0 }
 0xa89   :  { %v1810_v2 = vpack.c.bf16 %v1802_v8, %v1801_v7 }
 0xa8a   :  { %v1809_v36 = vpack.c.bf16 %v1800_v26, %v1799_v17 }
 0xa8c   :  { %2567 = vmatprep.mubr.bf16.mxu0 %v1809_v36 }
 0xa8d   :  { %2568 = vmatmul.mubr.bf16.gmra.mrb[92].mxu0 %v1810_v2 }
 0xb48   :  { %v2557_v19 = vpop.f32.mrb[80].mxu0 }
 0xb49   :  { %v1914_v27 = vpop.f32.mrb[81].mxu0  ;;  %v1923_v40 = vadd.f32 %v2557_v19, %v1831_v59 }
 0xb4a   :  { %v1915_v50 = vadd.f32 %v1914_v27, %v1831_v59  ;;  %v2558_v63 = vpop.f32.mrb[82].mxu0 }
 0xb4b   :  { %v1917_v14 = vpop.f32.mrb[83].mxu0  ;;  %v1926_v25 = vadd.f32 %v2558_v63, %v1831_v59 }
 0xb4c   :  { %1977 = vxpose.xlu0.b32.start [1/16] (narrow) %v1915_v50, 8  ;;  %v1918_v31 = vadd.f32 %v1917_v14, %v1831_v59 }
 0xb50   :  { %1978 = vxpose.xlu0.b32.cont [2/16] (narrow) %v1918_v31, 8  ;;  %v2561_v18 = vpop.f32.mrb[84].mxu0 }
 0xb51   :  { %v1930_v15 = vpop.f32.mrb[85].mxu0  ;;  %v1939_v46 = vadd.f32 %v2561_v18, %v1831_v59 }
 0xb52   :  { %v2562_v0 = vpop.f32.mrb[86].mxu0  ;;  %v1931_v44 = vadd.f32 %v1930_v15, %v1831_v59 }
 0xb53   :  { %v1933_v23 = vpop.f32.mrb[87].mxu0  ;;  %v1942_v30 = vadd.f32 %v2562_v0, %v1831_v59 }
 0xb54   :  { %1979 = vxpose.xlu0.b32.cont [3/16] (narrow) %v1923_v40, 8  ;;  %v1934_v52 = vadd.f32 %v1933_v23, %v1831_v59 }
 0xb58   :  { %1980 = vxpose.xlu0.b32.cont [4/16] (narrow) %v1926_v25, 8  ;;  %v2565_v39 = vpop.f32.mrb[88].mxu0 }
 0xb59   :  { %v1946_v34 = vpop.f32.mrb[89].mxu0  ;;  %v1955_v43 = vadd.f32 %v2565_v39, %v1831_v59 }
 0xb5a   :  { %v2566_v22 = vpop.f32.mrb[90].mxu0  ;;  %v1947_v54 = vadd.f32 %v1946_v34, %v1831_v59 }
 0xb5b   :  { %v1949_v6 = vpop.f32.mrb[91].mxu0  ;;  %v1958_v58 = vadd.f32 %v2566_v22, %v1831_v59 }
 0xb5c   :  { %1981 = vxpose.xlu0.b32.cont [5/16] (narrow) %v1931_v44, 8  ;;  %v1950_v55 = vadd.f32 %v1949_v6, %v1831_v59 }
 0xb60   :  { %1982 = vxpose.xlu0.b32.cont [6/16] (narrow) %v1934_v52, 8  ;;  %v2569_v32 = vpop.f32.mrb[92].mxu0 }
 0xb61   :  { %v1962_v1 = vpop.f32.mrb[93].mxu0  ;;  %v1971_v11 = vadd.f32 %v2569_v32, %v1831_v59 }
 0xb62   :  { %v2570_v13 = vpop.f32.mrb[94].mxu0  ;;  %v1963_v45 = vadd.f32 %v1962_v1, %v1831_v59 }
 0xb63   :  { %v1965_v29 = vpop.f32.mrb[95].mxu0  ;;  %v1974_v62 = vadd.f32 %v2570_v13, %v1831_v59 }
 0xb64   :  { %1983 = vxpose.xlu0.b32.cont [7/16] (narrow) %v1939_v46, 8  ;;  %v1966_v47 = vadd.f32 %v1965_v29, %v1831_v59 }
 0xb68   :  { %1984 = vxpose.xlu0.b32.cont [8/16] (narrow) %v1942_v30, 8 }
 0xb6c   :  { %1985 = vxpose.xlu0.b32.cont [9/16] (narrow) %v1947_v54, 8 }
 0xb70   :  { %1986 = vxpose.xlu0.b32.cont [10/16] (narrow) %v1950_v55, 8 }
 0xb74   :  { %1987 = vxpose.xlu0.b32.cont [11/16] (narrow) %v1955_v43, 8 }
 0xb78   :  { %1988 = vxpose.xlu0.b32.cont [12/16] (narrow) %v1958_v58, 8 }
 0xb7c   :  { %1989 = vxpose.xlu0.b32.cont [13/16] (narrow) %v1963_v45, 8 }
 0xb80   :  { %1990 = vxpose.xlu0.b32.cont [14/16] (narrow) %v1966_v47, 8 }
 0xb84   :  { %1991 = vxpose.xlu0.b32.cont [15/16] (narrow) %v1971_v11, 8 }
 0xb88   :  { %1992 = vxpose.xlu0.b32.end [16/16] (narrow) %v1974_v62, 8 }
 0xbcc   :  { %v1993_v10 = vpop.trf.xlu0 }
 0xbcd   :  { %2009 = vst [vmem:[%s3525_s4] sm:$0xff] %v1993_v10 }
 0xbce   :  { %2014 = vsyncpa [#allocation3], 1 }

</bundles_post_ra>
